<compile_context>
chip_gen: v5e
topology: v5e:2x2
jax: 0.10.0
libtpu: 0.0.40
codegen_flags: <defaults>
</compile_context>

<pallas_src>
import functools

import jax
import jax.numpy as jnp
from jax.experimental import pallas as pl
from jax.experimental.pallas import tpu as pltpu


def _round_up(x, m):
    return ((x + m - 1) // m) * m


def _vmem_limit_bytes():
    """Generation-aware VMEM limit (~3/4 of physical, clamped to sane bounds)."""
    cap = 64 * 1024 * 1024                       # conservative default (v7x TC)
    try:
        cap = int(pltpu.get_tpu_info().vmem_capacity_bytes)
    except Exception:
        pass
    return int(max(min(cap * 3 // 4, 100 * 1024 * 1024), 16 * 1024 * 1024))


# Tap enumeration: conv tap (ky, kx) = (2*dy + py, 2*dx + px).
_TERMS = tuple((dy, dx, py, px)
               for dy in range(2) for dx in range(2)
               for py in range(2) for px in range(2))


# ---------------------------------------------------------------------------
# Pallas kernels
# ---------------------------------------------------------------------------
def _conv_fused_kernel(*refs, owp, lop, bn, presliced, neg_slope):
    """Fused im2col + matmul (+ LeakyReLU or BN partial stats) for one image.

    Strip coordinates: column m' = y*owp + x (one junk column x == ow per row).
    Tap (dy, dx, py, px) reads phase (py, px) shifted by off = dy*owp + dx.
    """
    if bn:
        wt_ref, b_ref, mask_ref, y_ref, sum_ref, ssq_ref = refs
    else:
        wt_ref, b_ref, y_ref = refs

    cout_pad = wt_ref.shape[1]
    acc = jnp.zeros((cout_pad, lop), jnp.float32)
    for py in range(2):
        for px in range(2):
            ph = py * 2 + px
            bphase = None if presliced else b_ref[0, ph]         # (Cin, Lalloc)
            for dy in range(2):
                for dx in range(2):
                    t = dy * 8 + dx * 4 + py * 2 + px            # _TERMS order
                    if presliced:
                        op = b_ref[0, (dy * 2 + dx) * 4 + ph]    # (Cin, lop)
                    else:
                        off = dy * owp + dx
                        op = bphase[:, off:off + lop]            # shifted view
                    acc = acc + jnp.dot(wt_ref[t], op,
                                        preferred_element_type=jnp.float32)

    if bn:
        accv = acc * mask_ref[...]           # zero junk / pad columns for stats
        sum_ref[0] = jnp.sum(accv, axis=1, keepdims=True)
        ssq_ref[0] = jnp.sum(accv * accv, axis=1, keepdims=True)
        y_ref[0] = acc.astype(y_ref.dtype)                   # bf16 intermediate
    else:
        acc = jnp.where(acc >= 0.0, acc, neg_slope * acc)     # fused LeakyReLU
        y_ref[0] = acc.astype(y_ref.dtype)


def _bn_lrelu_kernel(y_ref, sc_ref, sh_ref, o_ref, *, neg_slope):
    """o = leaky_relu(y * scale + shift), per-channel scale/shift, f32 math."""
    z = y_ref[0].astype(jnp.float32) * sc_ref[...] + sh_ref[...]
    o_ref[0] = jnp.where(z >= 0.0, z, neg_slope * z)


# ---------------------------------------------------------------------------
# pallas_call wrappers
# ---------------------------------------------------------------------------
def _conv_down(wt, b, mask, *, n, cout_pad, owp, lop, bn, presliced,
               neg_slope, out_dtype):
    # TODO(synk): single-buffer the resident weight block (pl.Buffered(1)) and
    # tile Cin when 4*Cin*Lalloc + 16*Cout_pad*Cin exceeds the VMEM budget
    # (very deep layers / very large images).
    # TODO(synk): when N == 1, also split the strip axis so v7x's second
    # TensorCore gets work.
    kern = functools.partial(_conv_fused_kernel, owp=owp, lop=lop, bn=bn,
                             presliced=presliced, neg_slope=neg_slope)
    in_specs = [
        pl.BlockSpec(wt.shape, lambda i: (0, 0, 0)),          # resident weights
        pl.BlockSpec((1,) + b.shape[1:], lambda i: (i, 0, 0, 0)),
    ]
    operands = [wt, b]
    cparams = pltpu.CompilerParams(dimension_semantics=("parallel",),
                                   vmem_limit_bytes=_vmem_limit_bytes())
    if bn:
        in_specs.append(pl.BlockSpec(mask.shape, lambda i: (0, 0)))
        operands.append(mask)
        out_shape = (jax.ShapeDtypeStruct((n, cout_pad, lop), out_dtype),
                     jax.ShapeDtypeStruct((n, cout_pad, 1), jnp.float32),
                     jax.ShapeDtypeStruct((n, cout_pad, 1), jnp.float32))
        out_specs = (pl.BlockSpec((1, cout_pad, lop), lambda i: (i, 0, 0)),
                     pl.BlockSpec((1, cout_pad, 1), lambda i: (i, 0, 0)),
                     pl.BlockSpec((1, cout_pad, 1), lambda i: (i, 0, 0)))
    else:
        out_shape = jax.ShapeDtypeStruct((n, cout_pad, lop), out_dtype)
        out_specs = pl.BlockSpec((1, cout_pad, lop), lambda i: (i, 0, 0))

    return pl.pallas_call(kern, grid=(n,), in_specs=in_specs,
                          out_specs=out_specs, out_shape=out_shape,
                          compiler_params=cparams)(*operands)


def _bn_lrelu(y, scale, shift, *, neg_slope):
    n, cout_pad, lop = y.shape
    return pl.pallas_call(
        functools.partial(_bn_lrelu_kernel, neg_slope=neg_slope),
        grid=(n,),
        in_specs=[pl.BlockSpec((1, cout_pad, lop), lambda i: (i, 0, 0)),
                  pl.BlockSpec((cout_pad, 1), lambda i: (0, 0)),
                  pl.BlockSpec((cout_pad, 1), lambda i: (0, 0))],
        out_specs=pl.BlockSpec((1, cout_pad, lop), lambda i: (i, 0, 0)),
        out_shape=jax.ShapeDtypeStruct((n, cout_pad, lop), jnp.float32),
        compiler_params=pltpu.CompilerParams(
            dimension_semantics=("parallel",),
            vmem_limit_bytes=_vmem_limit_bytes()),
    )(y, scale, shift)


# ---------------------------------------------------------------------------
# Plain-JAX glue: phase strips + per-tap weights (no 4x im2col duplication)
# ---------------------------------------------------------------------------
def _build_phase_strips(x, *, oh, ow, owp, lstrip, lalloc, lop, presliced):
    """x (N,Cin,H,W) -> bf16 phase strips.

    Fused path:     (N, 4, Cin, Lalloc), strip[ph][ci, r*owp + c] = xpad[2r+py, 2c+px]
    Presliced path: (N, 16, Cin, lop)    (4 (dy,dx) shifts pre-extracted in XLA)
    """
    n, cin = x.shape[0], x.shape[1]
    xp = jnp.pad(x.astype(jnp.bfloat16), ((0, 0), (0, 0), (1, 1), (1, 1)))
    phases = []
    for py in range(2):
        for px in range(2):
            sub = xp[:, :, py:py + 2 * oh + 1:2, px:px + 2 * ow + 1:2]
            phases.append(sub.reshape(n, cin, lstrip))
    b = jnp.stack(phases, axis=1)                              # (N, 4, Cin, Lstrip)
    b = jnp.pad(b, ((0, 0), (0, 0), (0, 0), (0, lalloc - lstrip)))
    if not presliced:
        return b
    shifted = [b[..., dy * owp + dx:dy * owp + dx + lop]
               for dy in range(2) for dx in range(2)]          # 4 x (N,4,Cin,lop)
    return jnp.stack(shifted, axis=1).reshape(n, 16, cin, lop)


def _build_term_weights(w, cout_pad):
    """w (Cout, Cin, 4, 4) -> (16, Cout_pad, Cin) bf16, term order = _TERMS."""
    cout = w.shape[0]
    wt = jnp.stack([w[:, :, 2 * dy + py, 2 * dx + px]
                    for dy, dx, py, px in _TERMS], axis=0)
    wt = jnp.pad(wt, ((0, 0), (0, cout_pad - cout), (0, 0)))
    return wt.astype(jnp.bfloat16)


# ---------------------------------------------------------------------------
# UNetDown forward
# ---------------------------------------------------------------------------
def unet_down_forward(params, x, *, bn=True, eps=1e-5, negative_slope=0.2,
                      fuse_im2col=True):
    """Conv2d(4,2,1,bias=False) [+ BatchNorm2d (batch stats)] + LeakyReLU(0.2)."""
    w = params["conv_w"]                          # (Cout, Cin, 4, 4) f32
    cout = w.shape[0]
    n, _, h, w_in = x.shape
    assert h % 2 == 0 and w_in % 2 == 0
    oh, ow = h // 2, w_in // 2
    owp = ow + 1                                  # strip pitch (1 junk col / row)
    lout = oh * owp                               # strip span of the real outputs
    lop = _round_up(lout, 128)                    # lane-dense kernel width
    lstrip = (oh + 1) * owp
    lalloc = _round_up(owp + 1 + lop, 128)        # room for the largest tap shift
    cout_pad = _round_up(cout, 16)                # bf16 sublane packing

    wt = _build_term_weights(w, cout_pad)
    b = _build_phase_strips(x, oh=oh, ow=ow, owp=owp, lstrip=lstrip,
                            lalloc=lalloc, lop=lop, presliced=not fuse_im2col)

    if not bn:
        y = _conv_down(wt, b, None, n=n, cout_pad=cout_pad, owp=owp, lop=lop,
                       bn=False, presliced=not fuse_im2col,
                       neg_slope=negative_slope, out_dtype=jnp.float32)
    else:
        col = jnp.arange(lop)
        mask = ((col % owp < ow) & (col < lout)).astype(jnp.float32)[None, :]
        y, s1, s2 = _conv_down(wt, b, mask, n=n, cout_pad=cout_pad, owp=owp,
                               lop=lop, bn=True, presliced=not fuse_im2col,
                               neg_slope=negative_slope, out_dtype=jnp.bfloat16)
        cnt = jnp.float32(n * oh * ow)            # true element count (no pad)
        mean = jnp.sum(s1, axis=0) / cnt          # (Cout_pad, 1)
        var = jnp.maximum(jnp.sum(s2, axis=0) / cnt - mean * mean, 0.0)
        gamma = params["bn_gamma"].astype(jnp.float32).reshape(-1, 1)
        beta = params["bn_beta"].astype(jnp.float32).reshape(-1, 1)
        if cout_pad != cout:
            gamma = jnp.pad(gamma, ((0, cout_pad - cout), (0, 0)))
            beta = jnp.pad(beta, ((0, cout_pad - cout), (0, 0)))
        scale = gamma * jax.lax.rsqrt(var + eps)
        shift = beta - mean * scale
        y = _bn_lrelu(y, scale, shift, neg_slope=negative_slope)
        # TODO(synk): running-mean/var update (momentum=0.8) is training-time
        # bookkeeping only; it does not affect this forward output.

    # Channel-major strip -> (N, Cout, OH, OW): contiguous slice, no transpose.
    # TODO(synk): keep the strip layout between stacked UNetDown layers to
    # remove even this slice.
    return y[:, :cout, :lout].reshape(n, cout, oh, owp)[..., :ow]


# ---------------------------------------------------------------------------
# Params + pure-JAX reference + demo
# ---------------------------------------------------------------------------
def init_params(key, in_size, out_size):
    conv_w = 0.05 * jax.random.normal(key, (out_size, in_size, 4, 4),
                                      dtype=jnp.float32)
    return {"conv_w": conv_w,
            "bn_gamma": jnp.ones((out_size,), jnp.float32),
            "bn_beta": jnp.zeros((out_size,), jnp.float32)}


def _reference_forward(params, x, *, bn=True, eps=1e-5, negative_slope=0.2):
    y = jax.lax.conv_general_dilated(
        x, params["conv_w"], window_strides=(2, 2), padding=((1, 1), (1, 1)),
        dimension_numbers=("NCHW", "OIHW", "NCHW"))
    if bn:
        mean = jnp.mean(y, axis=(0, 2, 3), keepdims=True)
        var = jnp.var(y, axis=(0, 2, 3), keepdims=True)
        g = params["bn_gamma"].reshape(1, -1, 1, 1)
        b = params["bn_beta"].reshape(1, -1, 1, 1)
        y = (y - mean) * jax.lax.rsqrt(var + eps) * g + b
    return jnp.where(y >= 0.0, y, negative_slope * y)


if __name__ == "__main__":
    in_size, out_size = 4, 32
    key = jax.random.PRNGKey(0)
    kx, kp = jax.random.split(key)
    x = jax.random.normal(kx, (2, in_size, 16, 16), dtype=jnp.float32)
    params = init_params(kp, in_size, out_size)

    ref_bn = _reference_forward(params, x, bn=True)
    ref_nobn = _reference_forward(params, x, bn=False)

    def _run_and_check(fuse):
        fwd_bn = jax.jit(functools.partial(unet_down_forward, bn=True,
                                           fuse_im2col=fuse))
        fwd_nobn = jax.jit(functools.partial(unet_down_forward, bn=False,
                                             fuse_im2col=fuse))
        y_bn = fwd_bn(params, x)
        y_nobn = fwd_nobn(params, x)
        jax.block_until_ready((y_bn, y_nobn))
        assert y_bn.shape == (2, out_size, 8, 8), y_bn.shape
        assert y_nobn.shape == (2, out_size, 8, 8), y_nobn.shape
        assert bool(jnp.all(jnp.isfinite(y_bn)))
        assert bool(jnp.all(jnp.isfinite(y_nobn)))
        err_bn = float(jnp.max(jnp.abs(y_bn - ref_bn)))
        err_nobn = float(jnp.max(jnp.abs(y_nobn - ref_nobn)))
        assert err_bn < 1e-1, err_bn          # bf16-operand matmul tolerance
        assert err_nobn < 1e-1, err_nobn
        return y_bn, y_nobn

    try:
        _run_and_check(fuse=True)             # fully fused im2col (primary path)
    except Exception:
        # Robustness fallback: pre-shifted taps (extra XLA traffic) if the
        # fused shifted-slice path fails to lower on this toolchain.
        _run_and_check(fuse=False)

    print("KERNEL_OK")
</pallas_src>

<mosaic_0001>
module attributes {stable_mosaic.version = 11 : i64} {
  func.func @_bn_lrelu_kernel(%arg0: i32, %arg1: memref<1x32x128xbf16, #tpu.memory_space<vmem>>, %arg2: memref<32x1xf32, #tpu.memory_space<vmem>>, %arg3: memref<32x1xf32, #tpu.memory_space<vmem>>, %arg4: memref<1x32x128xf32, #tpu.memory_space<vmem>>) attributes {dimension_semantics = [#tpu.dimension_semantics<parallel>], iteration_bounds = array<i64: 2>, scalar_prefetch = 0 : i64, scratch_operands = 0 : i64, tpu.core_type = #tpu.core_type<tc>, window_params = [{transform_indices = @transform_0, window_bounds = array<i64: 1, 32, 128>}, {pipeline_mode = #tpu.pipeline_mode<synchronous>, transform_indices = @transform_1, window_bounds = array<i64: 32, 1>}, {pipeline_mode = #tpu.pipeline_mode<synchronous>, transform_indices = @transform_2, window_bounds = array<i64: 32, 1>}, {transform_indices = @transform_3, window_bounds = array<i64: 1, 32, 128>}]} {
    %c0 = arith.constant 0 : index
    %c0_0 = arith.constant 0 : index
    %c0_1 = arith.constant 0 : index
    %0 = vector.load %arg1[%c0, %c0_0, %c0_1] : memref<1x32x128xbf16, #tpu.memory_space<vmem>>, vector<1x32x128xbf16>
    %1 = vector.shape_cast %0 : vector<1x32x128xbf16> to vector<32x128xbf16>
    %2 = arith.extf %1 : vector<32x128xbf16> to vector<32x128xf32>
    %c0_2 = arith.constant 0 : index
    %c0_3 = arith.constant 0 : index
    %3 = vector.load %arg2[%c0_2, %c0_3] : memref<32x1xf32, #tpu.memory_space<vmem>>, vector<32x1xf32>
    %4 = vector.broadcast %3 : vector<32x1xf32> to vector<32x128xf32>
    %5 = arith.mulf %2, %4 : vector<32x128xf32>
    %c0_4 = arith.constant 0 : index
    %c0_5 = arith.constant 0 : index
    %6 = vector.load %arg3[%c0_4, %c0_5] : memref<32x1xf32, #tpu.memory_space<vmem>>, vector<32x1xf32>
    %7 = vector.broadcast %6 : vector<32x1xf32> to vector<32x128xf32>
    %8 = arith.addf %5, %7 : vector<32x128xf32>
    %cst = arith.constant 0.000000e+00 : f32
    %9 = vector.broadcast %cst : f32 to vector<32x128xf32>
    %10 = arith.cmpf oge, %8, %9 : vector<32x128xf32>
    %cst_6 = arith.constant 2.000000e-01 : f32
    %11 = vector.broadcast %cst_6 : f32 to vector<32x128xf32>
    %12 = arith.mulf %11, %8 : vector<32x128xf32>
    %13 = arith.select %10, %8, %12 : vector<32x128xi1>, vector<32x128xf32>
    %c0_7 = arith.constant 0 : index
    %c0_8 = arith.constant 0 : index
    %c0_9 = arith.constant 0 : index
    %14 = vector.load %arg4[%c0_7, %c0_8, %c0_9] : memref<1x32x128xf32, #tpu.memory_space<vmem>>, vector<1x32x128xf32>
    %15 = vector.shape_cast %14 : vector<1x32x128xf32> to vector<32x128xf32>
    %16 = vector.shape_cast %13 : vector<32x128xf32> to vector<1x32x128xf32>
    tpu.vector_store %arg4[%c0_7, %c0_8, %c0_9], %16 {strides = array<i32>} : memref<1x32x128xf32, #tpu.memory_space<vmem>>, vector<1x32x128xf32>,
    return
  }
  func.func @transform_0(%arg0: i32) -> (i32, i32, i32) {
    %c0_i32 = arith.constant 0 : i32
    %c0_i32_0 = arith.constant 0 : i32
    %c0_i32_1 = arith.constant 0 : i32
    return %arg0, %c0_i32, %c0_i32_0 : i32, i32, i32
  }
  func.func @transform_1(%arg0: i32) -> (i32, i32) {
    %c0_i32 = arith.constant 0 : i32
    %c0_i32_0 = arith.constant 0 : i32
    %c0_i32_1 = arith.constant 0 : i32
    return %c0_i32, %c0_i32_0 : i32, i32
  }
  func.func @transform_2(%arg0: i32) -> (i32, i32) {
    %c0_i32 = arith.constant 0 : i32
    %c0_i32_0 = arith.constant 0 : i32
    %c0_i32_1 = arith.constant 0 : i32
    return %c0_i32, %c0_i32_0 : i32, i32
  }
  func.func @transform_3(%arg0: i32) -> (i32, i32, i32) {
    %c0_i32 = arith.constant 0 : i32
    %c0_i32_0 = arith.constant 0 : i32
    %c0_i32_1 = arith.constant 0 : i32
    return %arg0, %c0_i32, %c0_i32_0 : i32, i32, i32
  }
}

module attributes {stable_mosaic.version = 11 : i64} {
  func.func @_conv_fused_kernel(%arg0: i32, %arg1: memref<16x32x4xbf16, #tpu.memory_space<vmem>>, %arg2: memref<1x4x4x256xbf16, #tpu.memory_space<vmem>>, %arg3: memref<1x128xf32, #tpu.memory_space<vmem>>, %arg4: memref<1x32x128xbf16, #tpu.memory_space<vmem>>, %arg5: memref<1x32x1xf32, #tpu.memory_space<vmem>>, %arg6: memref<1x32x1xf32, #tpu.memory_space<vmem>>) attributes {dimension_semantics = [#tpu.dimension_semantics<parallel>], iteration_bounds = array<i64: 2>, scalar_prefetch = 0 : i64, scratch_operands = 0 : i64, tpu.core_type = #tpu.core_type<tc>, window_params = [{pipeline_mode = #tpu.pipeline_mode<synchronous>, transform_indices = @transform_0, window_bounds = array<i64: 16, 32, 4>}, {transform_indices = @transform_1, window_bounds = array<i64: 1, 4, 4, 256>}, {pipeline_mode = #tpu.pipeline_mode<synchronous>, transform_indices = @transform_2, window_bounds = array<i64: 1, 128>}, {transform_indices = @transform_3, window_bounds = array<i64: 1, 32, 128>}, {transform_indices = @transform_4, window_bounds = array<i64: 1, 32, 1>}, {transform_indices = @transform_5, window_bounds = array<i64: 1, 32, 1>}]} {
    %cst = arith.constant 0.000000e+00 : f32
    %0 = vector.broadcast %cst : f32 to vector<32x128xf32>
    %c0 = arith.constant 0 : index
    %c0_0 = arith.constant 0 : index
    %c0_1 = arith.constant 0 : index
    %c0_2 = arith.constant 0 : index
    %1 = vector.load %arg2[%c0, %c0_0, %c0_1, %c0_2] : memref<1x4x4x256xbf16, #tpu.memory_space<vmem>>, vector<1x1x4x256xbf16>
    %2 = vector.shape_cast %1 : vector<1x1x4x256xbf16> to vector<4x256xbf16>
    %3 = vector.extract_strided_slice %2 {offsets = [0, 0], sizes = [4, 128], strides = [1, 1]} : vector<4x256xbf16> to vector<4x128xbf16>
    %c0_3 = arith.constant 0 : index
    %c0_4 = arith.constant 0 : index
    %c0_5 = arith.constant 0 : index
    %4 = vector.load %arg1[%c0_3, %c0_4, %c0_5] : memref<16x32x4xbf16, #tpu.memory_space<vmem>>, vector<1x32x4xbf16>
    %5 = vector.shape_cast %4 : vector<1x32x4xbf16> to vector<32x4xbf16>
    %cst_6 = arith.constant dense<0.000000e+00> : vector<32x128xf32>
    %6 = tpu.matmul %5, %3, %cst_6 {dimension_numbers = #tpu.dot_dimension_numbers<[1], [0], [0], [1], [0, 0, 1, 1], [], []>} : vector<32x4xbf16>, vector<4x128xbf16>, vector<32x128xf32> -> vector<32x128xf32>
    %7 = arith.addf %0, %6 : vector<32x128xf32>
    %8 = vector.extract_strided_slice %2 {offsets = [0, 1], sizes = [4, 128], strides = [1, 1]} : vector<4x256xbf16> to vector<4x128xbf16>
    %c4 = arith.constant 4 : index
    %c0_7 = arith.constant 0 : index
    %c0_8 = arith.constant 0 : index
    %9 = vector.load %arg1[%c4, %c0_7, %c0_8] : memref<16x32x4xbf16, #tpu.memory_space<vmem>>, vector<1x32x4xbf16>
    %10 = vector.shape_cast %9 : vector<1x32x4xbf16> to vector<32x4xbf16>
    %cst_9 = arith.constant dense<0.000000e+00> : vector<32x128xf32>
    %11 = tpu.matmul %10, %8, %cst_9 {dimension_numbers = #tpu.dot_dimension_numbers<[1], [0], [0], [1], [0, 0, 1, 1], [], []>} : vector<32x4xbf16>, vector<4x128xbf16>, vector<32x128xf32> -> vector<32x128xf32>
    %12 = arith.addf %7, %11 : vector<32x128xf32>
    %13 = vector.extract_strided_slice %2 {offsets = [0, 9], sizes = [4, 128], strides = [1, 1]} : vector<4x256xbf16> to vector<4x128xbf16>
    %c8 = arith.constant 8 : index
    %c0_10 = arith.constant 0 : index
    %c0_11 = arith.constant 0 : index
    %14 = vector.load %arg1[%c8, %c0_10, %c0_11] : memref<16x32x4xbf16, #tpu.memory_space<vmem>>, vector<1x32x4xbf16>
    %15 = vector.shape_cast %14 : vector<1x32x4xbf16> to vector<32x4xbf16>
    %cst_12 = arith.constant dense<0.000000e+00> : vector<32x128xf32>
    %16 = tpu.matmul %15, %13, %cst_12 {dimension_numbers = #tpu.dot_dimension_numbers<[1], [0], [0], [1], [0, 0, 1, 1], [], []>} : vector<32x4xbf16>, vector<4x128xbf16>, vector<32x128xf32> -> vector<32x128xf32>
    %17 = arith.addf %12, %16 : vector<32x128xf32>
    %18 = vector.extract_strided_slice %2 {offsets = [0, 10], sizes = [4, 128], strides = [1, 1]} : vector<4x256xbf16> to vector<4x128xbf16>
    %c12 = arith.constant 12 : index
    %c0_13 = arith.constant 0 : index
    %c0_14 = arith.constant 0 : index
    %19 = vector.load %arg1[%c12, %c0_13, %c0_14] : memref<16x32x4xbf16, #tpu.memory_space<vmem>>, vector<1x32x4xbf16>
    %20 = vector.shape_cast %19 : vector<1x32x4xbf16> to vector<32x4xbf16>
    %cst_15 = arith.constant dense<0.000000e+00> : vector<32x128xf32>
    %21 = tpu.matmul %20, %18, %cst_15 {dimension_numbers = #tpu.dot_dimension_numbers<[1], [0], [0], [1], [0, 0, 1, 1], [], []>} : vector<32x4xbf16>, vector<4x128xbf16>, vector<32x128xf32> -> vector<32x128xf32>
    %22 = arith.addf %17, %21 : vector<32x128xf32>
    %c0_16 = arith.constant 0 : index
    %c1 = arith.constant 1 : index
    %c0_17 = arith.constant 0 : index
    %c0_18 = arith.constant 0 : index
    %23 = vector.load %arg2[%c0_16, %c1, %c0_17, %c0_18] : memref<1x4x4x256xbf16, #tpu.memory_space<vmem>>, vector<1x1x4x256xbf16>
    %24 = vector.shape_cast %23 : vector<1x1x4x256xbf16> to vector<4x256xbf16>
    %25 = vector.extract_strided_slice %24 {offsets = [0, 0], sizes = [4, 128], strides = [1, 1]} : vector<4x256xbf16> to vector<4x128xbf16>
    %c1_19 = arith.constant 1 : index
    %c0_20 = arith.constant 0 : index
    %c0_21 = arith.constant 0 : index
    %26 = vector.load %arg1[%c1_19, %c0_20, %c0_21] : memref<16x32x4xbf16, #tpu.memory_space<vmem>>, vector<1x32x4xbf16>
    %27 = vector.shape_cast %26 : vector<1x32x4xbf16> to vector<32x4xbf16>
    %cst_22 = arith.constant dense<0.000000e+00> : vector<32x128xf32>
    %28 = tpu.matmul %27, %25, %cst_22 {dimension_numbers = #tpu.dot_dimension_numbers<[1], [0], [0], [1], [0, 0, 1, 1], [], []>} : vector<32x4xbf16>, vector<4x128xbf16>, vector<32x128xf32> -> vector<32x128xf32>
    %29 = arith.addf %22, %28 : vector<32x128xf32>
    %30 = vector.extract_strided_slice %24 {offsets = [0, 1], sizes = [4, 128], strides = [1, 1]} : vector<4x256xbf16> to vector<4x128xbf16>
    %c5 = arith.constant 5 : index
    %c0_23 = arith.constant 0 : index
    %c0_24 = arith.constant 0 : index
    %31 = vector.load %arg1[%c5, %c0_23, %c0_24] : memref<16x32x4xbf16, #tpu.memory_space<vmem>>, vector<1x32x4xbf16>
    %32 = vector.shape_cast %31 : vector<1x32x4xbf16> to vector<32x4xbf16>
    %cst_25 = arith.constant dense<0.000000e+00> : vector<32x128xf32>
    %33 = tpu.matmul %32, %30, %cst_25 {dimension_numbers = #tpu.dot_dimension_numbers<[1], [0], [0], [1], [0, 0, 1, 1], [], []>} : vector<32x4xbf16>, vector<4x128xbf16>, vector<32x128xf32> -> vector<32x128xf32>
    %34 = arith.addf %29, %33 : vector<32x128xf32>
    %35 = vector.extract_strided_slice %24 {offsets = [0, 9], sizes = [4, 128], strides = [1, 1]} : vector<4x256xbf16> to vector<4x128xbf16>
    %c9 = arith.constant 9 : index
    %c0_26 = arith.constant 0 : index
    %c0_27 = arith.constant 0 : index
    %36 = vector.load %arg1[%c9, %c0_26, %c0_27] : memref<16x32x4xbf16, #tpu.memory_space<vmem>>, vector<1x32x4xbf16>
    %37 = vector.shape_cast %36 : vector<1x32x4xbf16> to vector<32x4xbf16>
    %cst_28 = arith.constant dense<0.000000e+00> : vector<32x128xf32>
    %38 = tpu.matmul %37, %35, %cst_28 {dimension_numbers = #tpu.dot_dimension_numbers<[1], [0], [0], [1], [0, 0, 1, 1], [], []>} : vector<32x4xbf16>, vector<4x128xbf16>, vector<32x128xf32> -> vector<32x128xf32>
    %39 = arith.addf %34, %38 : vector<32x128xf32>
    %40 = vector.extract_strided_slice %24 {offsets = [0, 10], sizes = [4, 128], strides = [1, 1]} : vector<4x256xbf16> to vector<4x128xbf16>
    %c13 = arith.constant 13 : index
    %c0_29 = arith.constant 0 : index
    %c0_30 = arith.constant 0 : index
    %41 = vector.load %arg1[%c13, %c0_29, %c0_30] : memref<16x32x4xbf16, #tpu.memory_space<vmem>>, vector<1x32x4xbf16>
    %42 = vector.shape_cast %41 : vector<1x32x4xbf16> to vector<32x4xbf16>
    %cst_31 = arith.constant dense<0.000000e+00> : vector<32x128xf32>
    %43 = tpu.matmul %42, %40, %cst_31 {dimension_numbers = #tpu.dot_dimension_numbers<[1], [0], [0], [1], [0, 0, 1, 1], [], []>} : vector<32x4xbf16>, vector<4x128xbf16>, vector<32x128xf32> -> vector<32x128xf32>
    %44 = arith.addf %39, %43 : vector<32x128xf32>
    %c0_32 = arith.constant 0 : index
    %c2 = arith.constant 2 : index
    %c0_33 = arith.constant 0 : index
    %c0_34 = arith.constant 0 : index
    %45 = vector.load %arg2[%c0_32, %c2, %c0_33, %c0_34] : memref<1x4x4x256xbf16, #tpu.memory_space<vmem>>, vector<1x1x4x256xbf16>
    %46 = vector.shape_cast %45 : vector<1x1x4x256xbf16> to vector<4x256xbf16>
    %47 = vector.extract_strided_slice %46 {offsets = [0, 0], sizes = [4, 128], strides = [1, 1]} : vector<4x256xbf16> to vector<4x128xbf16>
    %c2_35 = arith.constant 2 : index
    %c0_36 = arith.constant 0 : index
    %c0_37 = arith.constant 0 : index
    %48 = vector.load %arg1[%c2_35, %c0_36, %c0_37] : memref<16x32x4xbf16, #tpu.memory_space<vmem>>, vector<1x32x4xbf16>
    %49 = vector.shape_cast %48 : vector<1x32x4xbf16> to vector<32x4xbf16>
    %cst_38 = arith.constant dense<0.000000e+00> : vector<32x128xf32>
    %50 = tpu.matmul %49, %47, %cst_38 {dimension_numbers = #tpu.dot_dimension_numbers<[1], [0], [0], [1], [0, 0, 1, 1], [], []>} : vector<32x4xbf16>, vector<4x128xbf16>, vector<32x128xf32> -> vector<32x128xf32>
    %51 = arith.addf %44, %50 : vector<32x128xf32>
    %52 = vector.extract_strided_slice %46 {offsets = [0, 1], sizes = [4, 128], strides = [1, 1]} : vector<4x256xbf16> to vector<4x128xbf16>
    %c6 = arith.constant 6 : index
    %c0_39 = arith.constant 0 : index
    %c0_40 = arith.constant 0 : index
    %53 = vector.load %arg1[%c6, %c0_39, %c0_40] : memref<16x32x4xbf16, #tpu.memory_space<vmem>>, vector<1x32x4xbf16>
    %54 = vector.shape_cast %53 : vector<1x32x4xbf16> to vector<32x4xbf16>
    %cst_41 = arith.constant dense<0.000000e+00> : vector<32x128xf32>
    %55 = tpu.matmul %54, %52, %cst_41 {dimension_numbers = #tpu.dot_dimension_numbers<[1], [0], [0], [1], [0, 0, 1, 1], [], []>} : vector<32x4xbf16>, vector<4x128xbf16>, vector<32x128xf32> -> vector<32x128xf32>
    %56 = arith.addf %51, %55 : vector<32x128xf32>
    %57 = vector.extract_strided_slice %46 {offsets = [0, 9], sizes = [4, 128], strides = [1, 1]} : vector<4x256xbf16> to vector<4x128xbf16>
    %c10 = arith.constant 10 : index
    %c0_42 = arith.constant 0 : index
    %c0_43 = arith.constant 0 : index
    %58 = vector.load %arg1[%c10, %c0_42, %c0_43] : memref<16x32x4xbf16, #tpu.memory_space<vmem>>, vector<1x32x4xbf16>
    %59 = vector.shape_cast %58 : vector<1x32x4xbf16> to vector<32x4xbf16>
    %cst_44 = arith.constant dense<0.000000e+00> : vector<32x128xf32>
    %60 = tpu.matmul %59, %57, %cst_44 {dimension_numbers = #tpu.dot_dimension_numbers<[1], [0], [0], [1], [0, 0, 1, 1], [], []>} : vector<32x4xbf16>, vector<4x128xbf16>, vector<32x128xf32> -> vector<32x128xf32>
    %61 = arith.addf %56, %60 : vector<32x128xf32>
    %62 = vector.extract_strided_slice %46 {offsets = [0, 10], sizes = [4, 128], strides = [1, 1]} : vector<4x256xbf16> to vector<4x128xbf16>
    %c14 = arith.constant 14 : index
    %c0_45 = arith.constant 0 : index
    %c0_46 = arith.constant 0 : index
    %63 = vector.load %arg1[%c14, %c0_45, %c0_46] : memref<16x32x4xbf16, #tpu.memory_space<vmem>>, vector<1x32x4xbf16>
    %64 = vector.shape_cast %63 : vector<1x32x4xbf16> to vector<32x4xbf16>
    %cst_47 = arith.constant dense<0.000000e+00> : vector<32x128xf32>
    %65 = tpu.matmul %64, %62, %cst_47 {dimension_numbers = #tpu.dot_dimension_numbers<[1], [0], [0], [1], [0, 0, 1, 1], [], []>} : vector<32x4xbf16>, vector<4x128xbf16>, vector<32x128xf32> -> vector<32x128xf32>
    %66 = arith.addf %61, %65 : vector<32x128xf32>
    %c0_48 = arith.constant 0 : index
    %c3 = arith.constant 3 : index
    %c0_49 = arith.constant 0 : index
    %c0_50 = arith.constant 0 : index
    %67 = vector.load %arg2[%c0_48, %c3, %c0_49, %c0_50] : memref<1x4x4x256xbf16, #tpu.memory_space<vmem>>, vector<1x1x4x256xbf16>
    %68 = vector.shape_cast %67 : vector<1x1x4x256xbf16> to vector<4x256xbf16>
    %69 = vector.extract_strided_slice %68 {offsets = [0, 0], sizes = [4, 128], strides = [1, 1]} : vector<4x256xbf16> to vector<4x128xbf16>
    %c3_51 = arith.constant 3 : index
    %c0_52 = arith.constant 0 : index
    %c0_53 = arith.constant 0 : index
    %70 = vector.load %arg1[%c3_51, %c0_52, %c0_53] : memref<16x32x4xbf16, #tpu.memory_space<vmem>>, vector<1x32x4xbf16>
    %71 = vector.shape_cast %70 : vector<1x32x4xbf16> to vector<32x4xbf16>
    %cst_54 = arith.constant dense<0.000000e+00> : vector<32x128xf32>
    %72 = tpu.matmul %71, %69, %cst_54 {dimension_numbers = #tpu.dot_dimension_numbers<[1], [0], [0], [1], [0, 0, 1, 1], [], []>} : vector<32x4xbf16>, vector<4x128xbf16>, vector<32x128xf32> -> vector<32x128xf32>
    %73 = arith.addf %66, %72 : vector<32x128xf32>
    %74 = vector.extract_strided_slice %68 {offsets = [0, 1], sizes = [4, 128], strides = [1, 1]} : vector<4x256xbf16> to vector<4x128xbf16>
    %c7 = arith.constant 7 : index
    %c0_55 = arith.constant 0 : index
    %c0_56 = arith.constant 0 : index
    %75 = vector.load %arg1[%c7, %c0_55, %c0_56] : memref<16x32x4xbf16, #tpu.memory_space<vmem>>, vector<1x32x4xbf16>
    %76 = vector.shape_cast %75 : vector<1x32x4xbf16> to vector<32x4xbf16>
    %cst_57 = arith.constant dense<0.000000e+00> : vector<32x128xf32>
    %77 = tpu.matmul %76, %74, %cst_57 {dimension_numbers = #tpu.dot_dimension_numbers<[1], [0], [0], [1], [0, 0, 1, 1], [], []>} : vector<32x4xbf16>, vector<4x128xbf16>, vector<32x128xf32> -> vector<32x128xf32>
    %78 = arith.addf %73, %77 : vector<32x128xf32>
    %79 = vector.extract_strided_slice %68 {offsets = [0, 9], sizes = [4, 128], strides = [1, 1]} : vector<4x256xbf16> to vector<4x128xbf16>
    %c11 = arith.constant 11 : index
    %c0_58 = arith.constant 0 : index
    %c0_59 = arith.constant 0 : index
    %80 = vector.load %arg1[%c11, %c0_58, %c0_59] : memref<16x32x4xbf16, #tpu.memory_space<vmem>>, vector<1x32x4xbf16>
    %81 = vector.shape_cast %80 : vector<1x32x4xbf16> to vector<32x4xbf16>
    %cst_60 = arith.constant dense<0.000000e+00> : vector<32x128xf32>
    %82 = tpu.matmul %81, %79, %cst_60 {dimension_numbers = #tpu.dot_dimension_numbers<[1], [0], [0], [1], [0, 0, 1, 1], [], []>} : vector<32x4xbf16>, vector<4x128xbf16>, vector<32x128xf32> -> vector<32x128xf32>
    %83 = arith.addf %78, %82 : vector<32x128xf32>
    %84 = vector.extract_strided_slice %68 {offsets = [0, 10], sizes = [4, 128], strides = [1, 1]} : vector<4x256xbf16> to vector<4x128xbf16>
    %c15 = arith.constant 15 : index
    %c0_61 = arith.constant 0 : index
    %c0_62 = arith.constant 0 : index
    %85 = vector.load %arg1[%c15, %c0_61, %c0_62] : memref<16x32x4xbf16, #tpu.memory_space<vmem>>, vector<1x32x4xbf16>
    %86 = vector.shape_cast %85 : vector<1x32x4xbf16> to vector<32x4xbf16>
    %cst_63 = arith.constant dense<0.000000e+00> : vector<32x128xf32>
    %87 = tpu.matmul %86, %84, %cst_63 {dimension_numbers = #tpu.dot_dimension_numbers<[1], [0], [0], [1], [0, 0, 1, 1], [], []>} : vector<32x4xbf16>, vector<4x128xbf16>, vector<32x128xf32> -> vector<32x128xf32>
    %88 = arith.addf %83, %87 : vector<32x128xf32>
    %c0_64 = arith.constant 0 : index
    %c0_65 = arith.constant 0 : index
    %89 = vector.load %arg3[%c0_64, %c0_65] : memref<1x128xf32, #tpu.memory_space<vmem>>, vector<1x128xf32>
    %90 = vector.broadcast %89 : vector<1x128xf32> to vector<32x128xf32>
    %91 = arith.mulf %88, %90 : vector<32x128xf32>
    %cst_66 = arith.constant dense<0.000000e+00> : vector<32xf32>
    %92 = vector.multi_reduction <add>, %91, %cst_66 [1] : vector<32x128xf32> to vector<32xf32>
    %93 = vector.shape_cast %92 : vector<32xf32> to vector<32x1xf32>
    %c0_67 = arith.constant 0 : index
    %c0_68 = arith.constant 0 : index
    %c0_69 = arith.constant 0 : index
    %94 = vector.load %arg5[%c0_67, %c0_68, %c0_69] : memref<1x32x1xf32, #tpu.memory_space<vmem>>, vector<1x32x1xf32>
    %95 = vector.shape_cast %94 : vector<1x32x1xf32> to vector<32x1xf32>
    %96 = vector.shape_cast %93 : vector<32x1xf32> to vector<1x32x1xf32>
    tpu.vector_store %arg5[%c0_67, %c0_68, %c0_69], %96 {strides = array<i32>} : memref<1x32x1xf32, #tpu.memory_space<vmem>>, vector<1x32x1xf32>,
    %97 = arith.mulf %91, %91 : vector<32x128xf32>
    %cst_70 = arith.constant dense<0.000000e+00> : vector<32xf32>
    %98 = vector.multi_reduction <add>, %97, %cst_70 [1] : vector<32x128xf32> to vector<32xf32>
    %99 = vector.shape_cast %98 : vector<32xf32> to vector<32x1xf32>
    %c0_71 = arith.constant 0 : index
    %c0_72 = arith.constant 0 : index
    %c0_73 = arith.constant 0 : index
    %100 = vector.load %arg6[%c0_71, %c0_72, %c0_73] : memref<1x32x1xf32, #tpu.memory_space<vmem>>, vector<1x32x1xf32>
    %101 = vector.shape_cast %100 : vector<1x32x1xf32> to vector<32x1xf32>
    %102 = vector.shape_cast %99 : vector<32x1xf32> to vector<1x32x1xf32>
    tpu.vector_store %arg6[%c0_71, %c0_72, %c0_73], %102 {strides = array<i32>} : memref<1x32x1xf32, #tpu.memory_space<vmem>>, vector<1x32x1xf32>,
    %103 = arith.truncf %88 : vector<32x128xf32> to vector<32x128xbf16>
    %c0_74 = arith.constant 0 : index
    %c0_75 = arith.constant 0 : index
    %c0_76 = arith.constant 0 : index
    %104 = vector.load %arg4[%c0_74, %c0_75, %c0_76] : memref<1x32x128xbf16, #tpu.memory_space<vmem>>, vector<1x32x128xbf16>
    %105 = vector.shape_cast %104 : vector<1x32x128xbf16> to vector<32x128xbf16>
    %106 = vector.shape_cast %103 : vector<32x128xbf16> to vector<1x32x128xbf16>
    tpu.vector_store %arg4[%c0_74, %c0_75, %c0_76], %106 {strides = array<i32>} : memref<1x32x128xbf16, #tpu.memory_space<vmem>>, vector<1x32x128xbf16>,
    return
  }
  func.func @transform_0(%arg0: i32) -> (i32, i32, i32) {
    %c0_i32 = arith.constant 0 : i32
    %c0_i32_0 = arith.constant 0 : i32
    %c0_i32_1 = arith.constant 0 : i32
    %c0_i32_2 = arith.constant 0 : i32
    return %c0_i32, %c0_i32_0, %c0_i32_1 : i32, i32, i32
  }
  func.func @transform_1(%arg0: i32) -> (i32, i32, i32, i32) {
    %c0_i32 = arith.constant 0 : i32
    %c0_i32_0 = arith.constant 0 : i32
    %c0_i32_1 = arith.constant 0 : i32
    %c0_i32_2 = arith.constant 0 : i32
    return %arg0, %c0_i32, %c0_i32_0, %c0_i32_1 : i32, i32, i32, i32
  }
  func.func @transform_2(%arg0: i32) -> (i32, i32) {
    %c0_i32 = arith.constant 0 : i32
    %c0_i32_0 = arith.constant 0 : i32
    %c0_i32_1 = arith.constant 0 : i32
    return %c0_i32, %c0_i32_0 : i32, i32
  }
  func.func @transform_3(%arg0: i32) -> (i32, i32, i32) {
    %c0_i32 = arith.constant 0 : i32
    %c0_i32_0 = arith.constant 0 : i32
    %c0_i32_1 = arith.constant 0 : i32
    return %arg0, %c0_i32, %c0_i32_0 : i32, i32, i32
  }
  func.func @transform_4(%arg0: i32) -> (i32, i32, i32) {
    %c0_i32 = arith.constant 0 : i32
    %c0_i32_0 = arith.constant 0 : i32
    %c0_i32_1 = arith.constant 0 : i32
    return %arg0, %c0_i32, %c0_i32_0 : i32, i32, i32
  }
  func.func @transform_5(%arg0: i32) -> (i32, i32, i32) {
    %c0_i32 = arith.constant 0 : i32
    %c0_i32_0 = arith.constant 0 : i32
    %c0_i32_1 = arith.constant 0 : i32
    return %arg0, %c0_i32, %c0_i32_0 : i32, i32, i32
  }
}

module attributes {stable_mosaic.version = 11 : i64} {
  func.func @_bn_lrelu_kernel(%arg0: i32, %arg1: memref<1x32x128xbf16, #tpu.memory_space<vmem>>, %arg2: memref<32x1xf32, #tpu.memory_space<vmem>>, %arg3: memref<32x1xf32, #tpu.memory_space<vmem>>, %arg4: memref<1x32x128xf32, #tpu.memory_space<vmem>>) attributes {dimension_semantics = [#tpu.dimension_semantics<parallel>], iteration_bounds = array<i64: 2>, scalar_prefetch = 0 : i64, scratch_operands = 0 : i64, tpu.core_type = #tpu.core_type<tc>, window_params = [{transform_indices = @transform_0, window_bounds = array<i64: 1, 32, 128>}, {pipeline_mode = #tpu.pipeline_mode<synchronous>, transform_indices = @transform_1, window_bounds = array<i64: 32, 1>}, {pipeline_mode = #tpu.pipeline_mode<synchronous>, transform_indices = @transform_2, window_bounds = array<i64: 32, 1>}, {transform_indices = @transform_3, window_bounds = array<i64: 1, 32, 128>}]} {
    %c0 = arith.constant 0 : index
    %c0_0 = arith.constant 0 : index
    %c0_1 = arith.constant 0 : index
    %0 = vector.load %arg1[%c0, %c0_0, %c0_1] : memref<1x32x128xbf16, #tpu.memory_space<vmem>>, vector<1x32x128xbf16>
    %1 = vector.shape_cast %0 : vector<1x32x128xbf16> to vector<32x128xbf16>
    %2 = arith.extf %1 : vector<32x128xbf16> to vector<32x128xf32>
    %c0_2 = arith.constant 0 : index
    %c0_3 = arith.constant 0 : index
    %3 = vector.load %arg2[%c0_2, %c0_3] : memref<32x1xf32, #tpu.memory_space<vmem>>, vector<32x1xf32>
    %4 = vector.broadcast %3 : vector<32x1xf32> to vector<32x128xf32>
    %5 = arith.mulf %2, %4 : vector<32x128xf32>
    %c0_4 = arith.constant 0 : index
    %c0_5 = arith.constant 0 : index
    %6 = vector.load %arg3[%c0_4, %c0_5] : memref<32x1xf32, #tpu.memory_space<vmem>>, vector<32x1xf32>
    %7 = vector.broadcast %6 : vector<32x1xf32> to vector<32x128xf32>
    %8 = arith.addf %5, %7 : vector<32x128xf32>
    %cst = arith.constant 0.000000e+00 : f32
    %9 = vector.broadcast %cst : f32 to vector<32x128xf32>
    %10 = arith.cmpf oge, %8, %9 : vector<32x128xf32>
    %cst_6 = arith.constant 2.000000e-01 : f32
    %11 = vector.broadcast %cst_6 : f32 to vector<32x128xf32>
    %12 = arith.mulf %11, %8 : vector<32x128xf32>
    %13 = arith.select %10, %8, %12 : vector<32x128xi1>, vector<32x128xf32>
    %c0_7 = arith.constant 0 : index
    %c0_8 = arith.constant 0 : index
    %c0_9 = arith.constant 0 : index
    %14 = vector.load %arg4[%c0_7, %c0_8, %c0_9] : memref<1x32x128xf32, #tpu.memory_space<vmem>>, vector<1x32x128xf32>
    %15 = vector.shape_cast %14 : vector<1x32x128xf32> to vector<32x128xf32>
    %16 = vector.shape_cast %13 : vector<32x128xf32> to vector<1x32x128xf32>
    tpu.vector_store %arg4[%c0_7, %c0_8, %c0_9], %16 {strides = array<i32>} : memref<1x32x128xf32, #tpu.memory_space<vmem>>, vector<1x32x128xf32>,
    return
  }
  func.func @transform_0(%arg0: i32) -> (i32, i32, i32) {
    %c0_i32 = arith.constant 0 : i32
    %c0_i32_0 = arith.constant 0 : i32
    %c0_i32_1 = arith.constant 0 : i32
    return %arg0, %c0_i32, %c0_i32_0 : i32, i32, i32
  }
  func.func @transform_1(%arg0: i32) -> (i32, i32) {
    %c0_i32 = arith.constant 0 : i32
    %c0_i32_0 = arith.constant 0 : i32
    %c0_i32_1 = arith.constant 0 : i32
    return %c0_i32, %c0_i32_0 : i32, i32
  }
  func.func @transform_2(%arg0: i32) -> (i32, i32) {
    %c0_i32 = arith.constant 0 : i32
    %c0_i32_0 = arith.constant 0 : i32
    %c0_i32_1 = arith.constant 0 : i32
    return %c0_i32, %c0_i32_0 : i32, i32
  }
  func.func @transform_3(%arg0: i32) -> (i32, i32, i32) {
    %c0_i32 = arith.constant 0 : i32
    %c0_i32_0 = arith.constant 0 : i32
    %c0_i32_1 = arith.constant 0 : i32
    return %arg0, %c0_i32, %c0_i32_0 : i32, i32, i32
  }
}

module attributes {stable_mosaic.version = 11 : i64} {
  func.func @_conv_fused_kernel(%arg0: i32, %arg1: memref<16x32x4xbf16, #tpu.memory_space<vmem>>, %arg2: memref<1x16x4x128xbf16, #tpu.memory_space<vmem>>, %arg3: memref<1x128xf32, #tpu.memory_space<vmem>>, %arg4: memref<1x32x128xbf16, #tpu.memory_space<vmem>>, %arg5: memref<1x32x1xf32, #tpu.memory_space<vmem>>, %arg6: memref<1x32x1xf32, #tpu.memory_space<vmem>>) attributes {dimension_semantics = [#tpu.dimension_semantics<parallel>], iteration_bounds = array<i64: 2>, scalar_prefetch = 0 : i64, scratch_operands = 0 : i64, tpu.core_type = #tpu.core_type<tc>, window_params = [{pipeline_mode = #tpu.pipeline_mode<synchronous>, transform_indices = @transform_0, window_bounds = array<i64: 16, 32, 4>}, {transform_indices = @transform_1, window_bounds = array<i64: 1, 16, 4, 128>}, {pipeline_mode = #tpu.pipeline_mode<synchronous>, transform_indices = @transform_2, window_bounds = array<i64: 1, 128>}, {transform_indices = @transform_3, window_bounds = array<i64: 1, 32, 128>}, {transform_indices = @transform_4, window_bounds = array<i64: 1, 32, 1>}, {transform_indices = @transform_5, window_bounds = array<i64: 1, 32, 1>}]} {
    %cst = arith.constant 0.000000e+00 : f32
    %0 = vector.broadcast %cst : f32 to vector<32x128xf32>
    %c0 = arith.constant 0 : index
    %c0_0 = arith.constant 0 : index
    %c0_1 = arith.constant 0 : index
    %c0_2 = arith.constant 0 : index
    %1 = vector.load %arg2[%c0, %c0_0, %c0_1, %c0_2] : memref<1x16x4x128xbf16, #tpu.memory_space<vmem>>, vector<1x1x4x128xbf16>
    %2 = vector.shape_cast %1 : vector<1x1x4x128xbf16> to vector<4x128xbf16>
    %c0_3 = arith.constant 0 : index
    %c0_4 = arith.constant 0 : index
    %c0_5 = arith.constant 0 : index
    %3 = vector.load %arg1[%c0_3, %c0_4, %c0_5] : memref<16x32x4xbf16, #tpu.memory_space<vmem>>, vector<1x32x4xbf16>
    %4 = vector.shape_cast %3 : vector<1x32x4xbf16> to vector<32x4xbf16>
    %cst_6 = arith.constant dense<0.000000e+00> : vector<32x128xf32>
    %5 = tpu.matmul %4, %2, %cst_6 {dimension_numbers = #tpu.dot_dimension_numbers<[1], [0], [0], [1], [0, 0, 1, 1], [], []>} : vector<32x4xbf16>, vector<4x128xbf16>, vector<32x128xf32> -> vector<32x128xf32>
    %6 = arith.addf %0, %5 : vector<32x128xf32>
    %c0_7 = arith.constant 0 : index
    %c4 = arith.constant 4 : index
    %c0_8 = arith.constant 0 : index
    %c0_9 = arith.constant 0 : index
    %7 = vector.load %arg2[%c0_7, %c4, %c0_8, %c0_9] : memref<1x16x4x128xbf16, #tpu.memory_space<vmem>>, vector<1x1x4x128xbf16>
    %8 = vector.shape_cast %7 : vector<1x1x4x128xbf16> to vector<4x128xbf16>
    %c4_10 = arith.constant 4 : index
    %c0_11 = arith.constant 0 : index
    %c0_12 = arith.constant 0 : index
    %9 = vector.load %arg1[%c4_10, %c0_11, %c0_12] : memref<16x32x4xbf16, #tpu.memory_space<vmem>>, vector<1x32x4xbf16>
    %10 = vector.shape_cast %9 : vector<1x32x4xbf16> to vector<32x4xbf16>
    %cst_13 = arith.constant dense<0.000000e+00> : vector<32x128xf32>
    %11 = tpu.matmul %10, %8, %cst_13 {dimension_numbers = #tpu.dot_dimension_numbers<[1], [0], [0], [1], [0, 0, 1, 1], [], []>} : vector<32x4xbf16>, vector<4x128xbf16>, vector<32x128xf32> -> vector<32x128xf32>
    %12 = arith.addf %6, %11 : vector<32x128xf32>
    %c0_14 = arith.constant 0 : index
    %c8 = arith.constant 8 : index
    %c0_15 = arith.constant 0 : index
    %c0_16 = arith.constant 0 : index
    %13 = vector.load %arg2[%c0_14, %c8, %c0_15, %c0_16] : memref<1x16x4x128xbf16, #tpu.memory_space<vmem>>, vector<1x1x4x128xbf16>
    %14 = vector.shape_cast %13 : vector<1x1x4x128xbf16> to vector<4x128xbf16>
    %c8_17 = arith.constant 8 : index
    %c0_18 = arith.constant 0 : index
    %c0_19 = arith.constant 0 : index
    %15 = vector.load %arg1[%c8_17, %c0_18, %c0_19] : memref<16x32x4xbf16, #tpu.memory_space<vmem>>, vector<1x32x4xbf16>
    %16 = vector.shape_cast %15 : vector<1x32x4xbf16> to vector<32x4xbf16>
    %cst_20 = arith.constant dense<0.000000e+00> : vector<32x128xf32>
    %17 = tpu.matmul %16, %14, %cst_20 {dimension_numbers = #tpu.dot_dimension_numbers<[1], [0], [0], [1], [0, 0, 1, 1], [], []>} : vector<32x4xbf16>, vector<4x128xbf16>, vector<32x128xf32> -> vector<32x128xf32>
    %18 = arith.addf %12, %17 : vector<32x128xf32>
    %c0_21 = arith.constant 0 : index
    %c12 = arith.constant 12 : index
    %c0_22 = arith.constant 0 : index
    %c0_23 = arith.constant 0 : index
    %19 = vector.load %arg2[%c0_21, %c12, %c0_22, %c0_23] : memref<1x16x4x128xbf16, #tpu.memory_space<vmem>>, vector<1x1x4x128xbf16>
    %20 = vector.shape_cast %19 : vector<1x1x4x128xbf16> to vector<4x128xbf16>
    %c12_24 = arith.constant 12 : index
    %c0_25 = arith.constant 0 : index
    %c0_26 = arith.constant 0 : index
    %21 = vector.load %arg1[%c12_24, %c0_25, %c0_26] : memref<16x32x4xbf16, #tpu.memory_space<vmem>>, vector<1x32x4xbf16>
    %22 = vector.shape_cast %21 : vector<1x32x4xbf16> to vector<32x4xbf16>
    %cst_27 = arith.constant dense<0.000000e+00> : vector<32x128xf32>
    %23 = tpu.matmul %22, %20, %cst_27 {dimension_numbers = #tpu.dot_dimension_numbers<[1], [0], [0], [1], [0, 0, 1, 1], [], []>} : vector<32x4xbf16>, vector<4x128xbf16>, vector<32x128xf32> -> vector<32x128xf32>
    %24 = arith.addf %18, %23 : vector<32x128xf32>
    %c0_28 = arith.constant 0 : index
    %c1 = arith.constant 1 : index
    %c0_29 = arith.constant 0 : index
    %c0_30 = arith.constant 0 : index
    %25 = vector.load %arg2[%c0_28, %c1, %c0_29, %c0_30] : memref<1x16x4x128xbf16, #tpu.memory_space<vmem>>, vector<1x1x4x128xbf16>
    %26 = vector.shape_cast %25 : vector<1x1x4x128xbf16> to vector<4x128xbf16>
    %c1_31 = arith.constant 1 : index
    %c0_32 = arith.constant 0 : index
    %c0_33 = arith.constant 0 : index
    %27 = vector.load %arg1[%c1_31, %c0_32, %c0_33] : memref<16x32x4xbf16, #tpu.memory_space<vmem>>, vector<1x32x4xbf16>
    %28 = vector.shape_cast %27 : vector<1x32x4xbf16> to vector<32x4xbf16>
    %cst_34 = arith.constant dense<0.000000e+00> : vector<32x128xf32>
    %29 = tpu.matmul %28, %26, %cst_34 {dimension_numbers = #tpu.dot_dimension_numbers<[1], [0], [0], [1], [0, 0, 1, 1], [], []>} : vector<32x4xbf16>, vector<4x128xbf16>, vector<32x128xf32> -> vector<32x128xf32>
    %30 = arith.addf %24, %29 : vector<32x128xf32>
    %c0_35 = arith.constant 0 : index
    %c5 = arith.constant 5 : index
    %c0_36 = arith.constant 0 : index
    %c0_37 = arith.constant 0 : index
    %31 = vector.load %arg2[%c0_35, %c5, %c0_36, %c0_37] : memref<1x16x4x128xbf16, #tpu.memory_space<vmem>>, vector<1x1x4x128xbf16>
    %32 = vector.shape_cast %31 : vector<1x1x4x128xbf16> to vector<4x128xbf16>
    %c5_38 = arith.constant 5 : index
    %c0_39 = arith.constant 0 : index
    %c0_40 = arith.constant 0 : index
    %33 = vector.load %arg1[%c5_38, %c0_39, %c0_40] : memref<16x32x4xbf16, #tpu.memory_space<vmem>>, vector<1x32x4xbf16>
    %34 = vector.shape_cast %33 : vector<1x32x4xbf16> to vector<32x4xbf16>
    %cst_41 = arith.constant dense<0.000000e+00> : vector<32x128xf32>
    %35 = tpu.matmul %34, %32, %cst_41 {dimension_numbers = #tpu.dot_dimension_numbers<[1], [0], [0], [1], [0, 0, 1, 1], [], []>} : vector<32x4xbf16>, vector<4x128xbf16>, vector<32x128xf32> -> vector<32x128xf32>
    %36 = arith.addf %30, %35 : vector<32x128xf32>
    %c0_42 = arith.constant 0 : index
    %c9 = arith.constant 9 : index
    %c0_43 = arith.constant 0 : index
    %c0_44 = arith.constant 0 : index
    %37 = vector.load %arg2[%c0_42, %c9, %c0_43, %c0_44] : memref<1x16x4x128xbf16, #tpu.memory_space<vmem>>, vector<1x1x4x128xbf16>
    %38 = vector.shape_cast %37 : vector<1x1x4x128xbf16> to vector<4x128xbf16>
    %c9_45 = arith.constant 9 : index
    %c0_46 = arith.constant 0 : index
    %c0_47 = arith.constant 0 : index
    %39 = vector.load %arg1[%c9_45, %c0_46, %c0_47] : memref<16x32x4xbf16, #tpu.memory_space<vmem>>, vector<1x32x4xbf16>
    %40 = vector.shape_cast %39 : vector<1x32x4xbf16> to vector<32x4xbf16>
    %cst_48 = arith.constant dense<0.000000e+00> : vector<32x128xf32>
    %41 = tpu.matmul %40, %38, %cst_48 {dimension_numbers = #tpu.dot_dimension_numbers<[1], [0], [0], [1], [0, 0, 1, 1], [], []>} : vector<32x4xbf16>, vector<4x128xbf16>, vector<32x128xf32> -> vector<32x128xf32>
    %42 = arith.addf %36, %41 : vector<32x128xf32>
    %c0_49 = arith.constant 0 : index
    %c13 = arith.constant 13 : index
    %c0_50 = arith.constant 0 : index
    %c0_51 = arith.constant 0 : index
    %43 = vector.load %arg2[%c0_49, %c13, %c0_50, %c0_51] : memref<1x16x4x128xbf16, #tpu.memory_space<vmem>>, vector<1x1x4x128xbf16>
    %44 = vector.shape_cast %43 : vector<1x1x4x128xbf16> to vector<4x128xbf16>
    %c13_52 = arith.constant 13 : index
    %c0_53 = arith.constant 0 : index
    %c0_54 = arith.constant 0 : index
    %45 = vector.load %arg1[%c13_52, %c0_53, %c0_54] : memref<16x32x4xbf16, #tpu.memory_space<vmem>>, vector<1x32x4xbf16>
    %46 = vector.shape_cast %45 : vector<1x32x4xbf16> to vector<32x4xbf16>
    %cst_55 = arith.constant dense<0.000000e+00> : vector<32x128xf32>
    %47 = tpu.matmul %46, %44, %cst_55 {dimension_numbers = #tpu.dot_dimension_numbers<[1], [0], [0], [1], [0, 0, 1, 1], [], []>} : vector<32x4xbf16>, vector<4x128xbf16>, vector<32x128xf32> -> vector<32x128xf32>
    %48 = arith.addf %42, %47 : vector<32x128xf32>
    %c0_56 = arith.constant 0 : index
    %c2 = arith.constant 2 : index
    %c0_57 = arith.constant 0 : index
    %c0_58 = arith.constant 0 : index
    %49 = vector.load %arg2[%c0_56, %c2, %c0_57, %c0_58] : memref<1x16x4x128xbf16, #tpu.memory_space<vmem>>, vector<1x1x4x128xbf16>
    %50 = vector.shape_cast %49 : vector<1x1x4x128xbf16> to vector<4x128xbf16>
    %c2_59 = arith.constant 2 : index
    %c0_60 = arith.constant 0 : index
    %c0_61 = arith.constant 0 : index
    %51 = vector.load %arg1[%c2_59, %c0_60, %c0_61] : memref<16x32x4xbf16, #tpu.memory_space<vmem>>, vector<1x32x4xbf16>
    %52 = vector.shape_cast %51 : vector<1x32x4xbf16> to vector<32x4xbf16>
    %cst_62 = arith.constant dense<0.000000e+00> : vector<32x128xf32>
    %53 = tpu.matmul %52, %50, %cst_62 {dimension_numbers = #tpu.dot_dimension_numbers<[1], [0], [0], [1], [0, 0, 1, 1], [], []>} : vector<32x4xbf16>, vector<4x128xbf16>, vector<32x128xf32> -> vector<32x128xf32>
    %54 = arith.addf %48, %53 : vector<32x128xf32>
    %c0_63 = arith.constant 0 : index
    %c6 = arith.constant 6 : index
    %c0_64 = arith.constant 0 : index
    %c0_65 = arith.constant 0 : index
    %55 = vector.load %arg2[%c0_63, %c6, %c0_64, %c0_65] : memref<1x16x4x128xbf16, #tpu.memory_space<vmem>>, vector<1x1x4x128xbf16>
    %56 = vector.shape_cast %55 : vector<1x1x4x128xbf16> to vector<4x128xbf16>
    %c6_66 = arith.constant 6 : index
    %c0_67 = arith.constant 0 : index
    %c0_68 = arith.constant 0 : index
    %57 = vector.load %arg1[%c6_66, %c0_67, %c0_68] : memref<16x32x4xbf16, #tpu.memory_space<vmem>>, vector<1x32x4xbf16>
    %58 = vector.shape_cast %57 : vector<1x32x4xbf16> to vector<32x4xbf16>
    %cst_69 = arith.constant dense<0.000000e+00> : vector<32x128xf32>
    %59 = tpu.matmul %58, %56, %cst_69 {dimension_numbers = #tpu.dot_dimension_numbers<[1], [0], [0], [1], [0, 0, 1, 1], [], []>} : vector<32x4xbf16>, vector<4x128xbf16>, vector<32x128xf32> -> vector<32x128xf32>
    %60 = arith.addf %54, %59 : vector<32x128xf32>
    %c0_70 = arith.constant 0 : index
    %c10 = arith.constant 10 : index
    %c0_71 = arith.constant 0 : index
    %c0_72 = arith.constant 0 : index
    %61 = vector.load %arg2[%c0_70, %c10, %c0_71, %c0_72] : memref<1x16x4x128xbf16, #tpu.memory_space<vmem>>, vector<1x1x4x128xbf16>
    %62 = vector.shape_cast %61 : vector<1x1x4x128xbf16> to vector<4x128xbf16>
    %c10_73 = arith.constant 10 : index
    %c0_74 = arith.constant 0 : index
    %c0_75 = arith.constant 0 : index
    %63 = vector.load %arg1[%c10_73, %c0_74, %c0_75] : memref<16x32x4xbf16, #tpu.memory_space<vmem>>, vector<1x32x4xbf16>
    %64 = vector.shape_cast %63 : vector<1x32x4xbf16> to vector<32x4xbf16>
    %cst_76 = arith.constant dense<0.000000e+00> : vector<32x128xf32>
    %65 = tpu.matmul %64, %62, %cst_76 {dimension_numbers = #tpu.dot_dimension_numbers<[1], [0], [0], [1], [0, 0, 1, 1], [], []>} : vector<32x4xbf16>, vector<4x128xbf16>, vector<32x128xf32> -> vector<32x128xf32>
    %66 = arith.addf %60, %65 : vector<32x128xf32>
    %c0_77 = arith.constant 0 : index
    %c14 = arith.constant 14 : index
    %c0_78 = arith.constant 0 : index
    %c0_79 = arith.constant 0 : index
    %67 = vector.load %arg2[%c0_77, %c14, %c0_78, %c0_79] : memref<1x16x4x128xbf16, #tpu.memory_space<vmem>>, vector<1x1x4x128xbf16>
    %68 = vector.shape_cast %67 : vector<1x1x4x128xbf16> to vector<4x128xbf16>
    %c14_80 = arith.constant 14 : index
    %c0_81 = arith.constant 0 : index
    %c0_82 = arith.constant 0 : index
    %69 = vector.load %arg1[%c14_80, %c0_81, %c0_82] : memref<16x32x4xbf16, #tpu.memory_space<vmem>>, vector<1x32x4xbf16>
    %70 = vector.shape_cast %69 : vector<1x32x4xbf16> to vector<32x4xbf16>
    %cst_83 = arith.constant dense<0.000000e+00> : vector<32x128xf32>
    %71 = tpu.matmul %70, %68, %cst_83 {dimension_numbers = #tpu.dot_dimension_numbers<[1], [0], [0], [1], [0, 0, 1, 1], [], []>} : vector<32x4xbf16>, vector<4x128xbf16>, vector<32x128xf32> -> vector<32x128xf32>
    %72 = arith.addf %66, %71 : vector<32x128xf32>
    %c0_84 = arith.constant 0 : index
    %c3 = arith.constant 3 : index
    %c0_85 = arith.constant 0 : index
    %c0_86 = arith.constant 0 : index
    %73 = vector.load %arg2[%c0_84, %c3, %c0_85, %c0_86] : memref<1x16x4x128xbf16, #tpu.memory_space<vmem>>, vector<1x1x4x128xbf16>
    %74 = vector.shape_cast %73 : vector<1x1x4x128xbf16> to vector<4x128xbf16>
    %c3_87 = arith.constant 3 : index
    %c0_88 = arith.constant 0 : index
    %c0_89 = arith.constant 0 : index
    %75 = vector.load %arg1[%c3_87, %c0_88, %c0_89] : memref<16x32x4xbf16, #tpu.memory_space<vmem>>, vector<1x32x4xbf16>
    %76 = vector.shape_cast %75 : vector<1x32x4xbf16> to vector<32x4xbf16>
    %cst_90 = arith.constant dense<0.000000e+00> : vector<32x128xf32>
    %77 = tpu.matmul %76, %74, %cst_90 {dimension_numbers = #tpu.dot_dimension_numbers<[1], [0], [0], [1], [0, 0, 1, 1], [], []>} : vector<32x4xbf16>, vector<4x128xbf16>, vector<32x128xf32> -> vector<32x128xf32>
    %78 = arith.addf %72, %77 : vector<32x128xf32>
    %c0_91 = arith.constant 0 : index
    %c7 = arith.constant 7 : index
    %c0_92 = arith.constant 0 : index
    %c0_93 = arith.constant 0 : index
    %79 = vector.load %arg2[%c0_91, %c7, %c0_92, %c0_93] : memref<1x16x4x128xbf16, #tpu.memory_space<vmem>>, vector<1x1x4x128xbf16>
    %80 = vector.shape_cast %79 : vector<1x1x4x128xbf16> to vector<4x128xbf16>
    %c7_94 = arith.constant 7 : index
    %c0_95 = arith.constant 0 : index
    %c0_96 = arith.constant 0 : index
    %81 = vector.load %arg1[%c7_94, %c0_95, %c0_96] : memref<16x32x4xbf16, #tpu.memory_space<vmem>>, vector<1x32x4xbf16>
    %82 = vector.shape_cast %81 : vector<1x32x4xbf16> to vector<32x4xbf16>
    %cst_97 = arith.constant dense<0.000000e+00> : vector<32x128xf32>
    %83 = tpu.matmul %82, %80, %cst_97 {dimension_numbers = #tpu.dot_dimension_numbers<[1], [0], [0], [1], [0, 0, 1, 1], [], []>} : vector<32x4xbf16>, vector<4x128xbf16>, vector<32x128xf32> -> vector<32x128xf32>
    %84 = arith.addf %78, %83 : vector<32x128xf32>
    %c0_98 = arith.constant 0 : index
    %c11 = arith.constant 11 : index
    %c0_99 = arith.constant 0 : index
    %c0_100 = arith.constant 0 : index
    %85 = vector.load %arg2[%c0_98, %c11, %c0_99, %c0_100] : memref<1x16x4x128xbf16, #tpu.memory_space<vmem>>, vector<1x1x4x128xbf16>
    %86 = vector.shape_cast %85 : vector<1x1x4x128xbf16> to vector<4x128xbf16>
    %c11_101 = arith.constant 11 : index
    %c0_102 = arith.constant 0 : index
    %c0_103 = arith.constant 0 : index
    %87 = vector.load %arg1[%c11_101, %c0_102, %c0_103] : memref<16x32x4xbf16, #tpu.memory_space<vmem>>, vector<1x32x4xbf16>
    %88 = vector.shape_cast %87 : vector<1x32x4xbf16> to vector<32x4xbf16>
    %cst_104 = arith.constant dense<0.000000e+00> : vector<32x128xf32>
    %89 = tpu.matmul %88, %86, %cst_104 {dimension_numbers = #tpu.dot_dimension_numbers<[1], [0], [0], [1], [0, 0, 1, 1], [], []>} : vector<32x4xbf16>, vector<4x128xbf16>, vector<32x128xf32> -> vector<32x128xf32>
    %90 = arith.addf %84, %89 : vector<32x128xf32>
    %c0_105 = arith.constant 0 : index
    %c15 = arith.constant 15 : index
    %c0_106 = arith.constant 0 : index
    %c0_107 = arith.constant 0 : index
    %91 = vector.load %arg2[%c0_105, %c15, %c0_106, %c0_107] : memref<1x16x4x128xbf16, #tpu.memory_space<vmem>>, vector<1x1x4x128xbf16>
    %92 = vector.shape_cast %91 : vector<1x1x4x128xbf16> to vector<4x128xbf16>
    %c15_108 = arith.constant 15 : index
    %c0_109 = arith.constant 0 : index
    %c0_110 = arith.constant 0 : index
    %93 = vector.load %arg1[%c15_108, %c0_109, %c0_110] : memref<16x32x4xbf16, #tpu.memory_space<vmem>>, vector<1x32x4xbf16>
    %94 = vector.shape_cast %93 : vector<1x32x4xbf16> to vector<32x4xbf16>
    %cst_111 = arith.constant dense<0.000000e+00> : vector<32x128xf32>
    %95 = tpu.matmul %94, %92, %cst_111 {dimension_numbers = #tpu.dot_dimension_numbers<[1], [0], [0], [1], [0, 0, 1, 1], [], []>} : vector<32x4xbf16>, vector<4x128xbf16>, vector<32x128xf32> -> vector<32x128xf32>
    %96 = arith.addf %90, %95 : vector<32x128xf32>
    %c0_112 = arith.constant 0 : index
    %c0_113 = arith.constant 0 : index
    %97 = vector.load %arg3[%c0_112, %c0_113] : memref<1x128xf32, #tpu.memory_space<vmem>>, vector<1x128xf32>
    %98 = vector.broadcast %97 : vector<1x128xf32> to vector<32x128xf32>
    %99 = arith.mulf %96, %98 : vector<32x128xf32>
    %cst_114 = arith.constant dense<0.000000e+00> : vector<32xf32>
    %100 = vector.multi_reduction <add>, %99, %cst_114 [1] : vector<32x128xf32> to vector<32xf32>
    %101 = vector.shape_cast %100 : vector<32xf32> to vector<32x1xf32>
    %c0_115 = arith.constant 0 : index
    %c0_116 = arith.constant 0 : index
    %c0_117 = arith.constant 0 : index
    %102 = vector.load %arg5[%c0_115, %c0_116, %c0_117] : memref<1x32x1xf32, #tpu.memory_space<vmem>>, vector<1x32x1xf32>
    %103 = vector.shape_cast %102 : vector<1x32x1xf32> to vector<32x1xf32>
    %104 = vector.shape_cast %101 : vector<32x1xf32> to vector<1x32x1xf32>
    tpu.vector_store %arg5[%c0_115, %c0_116, %c0_117], %104 {strides = array<i32>} : memref<1x32x1xf32, #tpu.memory_space<vmem>>, vector<1x32x1xf32>,
    %105 = arith.mulf %99, %99 : vector<32x128xf32>
    %cst_118 = arith.constant dense<0.000000e+00> : vector<32xf32>
    %106 = vector.multi_reduction <add>, %105, %cst_118 [1] : vector<32x128xf32> to vector<32xf32>
    %107 = vector.shape_cast %106 : vector<32xf32> to vector<32x1xf32>
    %c0_119 = arith.constant 0 : index
    %c0_120 = arith.constant 0 : index
    %c0_121 = arith.constant 0 : index
    %108 = vector.load %arg6[%c0_119, %c0_120, %c0_121] : memref<1x32x1xf32, #tpu.memory_space<vmem>>, vector<1x32x1xf32>
    %109 = vector.shape_cast %108 : vector<1x32x1xf32> to vector<32x1xf32>
    %110 = vector.shape_cast %107 : vector<32x1xf32> to vector<1x32x1xf32>
    tpu.vector_store %arg6[%c0_119, %c0_120, %c0_121], %110 {strides = array<i32>} : memref<1x32x1xf32, #tpu.memory_space<vmem>>, vector<1x32x1xf32>,
    %111 = arith.truncf %96 : vector<32x128xf32> to vector<32x128xbf16>
    %c0_122 = arith.constant 0 : index
    %c0_123 = arith.constant 0 : index
    %c0_124 = arith.constant 0 : index
    %112 = vector.load %arg4[%c0_122, %c0_123, %c0_124] : memref<1x32x128xbf16, #tpu.memory_space<vmem>>, vector<1x32x128xbf16>
    %113 = vector.shape_cast %112 : vector<1x32x128xbf16> to vector<32x128xbf16>
    %114 = vector.shape_cast %111 : vector<32x128xbf16> to vector<1x32x128xbf16>
    tpu.vector_store %arg4[%c0_122, %c0_123, %c0_124], %114 {strides = array<i32>} : memref<1x32x128xbf16, #tpu.memory_space<vmem>>, vector<1x32x128xbf16>,
    return
  }
  func.func @transform_0(%arg0: i32) -> (i32, i32, i32) {
    %c0_i32 = arith.constant 0 : i32
    %c0_i32_0 = arith.constant 0 : i32
    %c0_i32_1 = arith.constant 0 : i32
    %c0_i32_2 = arith.constant 0 : i32
    return %c0_i32, %c0_i32_0, %c0_i32_1 : i32, i32, i32
  }
  func.func @transform_1(%arg0: i32) -> (i32, i32, i32, i32) {
    %c0_i32 = arith.constant 0 : i32
    %c0_i32_0 = arith.constant 0 : i32
    %c0_i32_1 = arith.constant 0 : i32
    %c0_i32_2 = arith.constant 0 : i32
    return %arg0, %c0_i32, %c0_i32_0, %c0_i32_1 : i32, i32, i32, i32
  }
  func.func @transform_2(%arg0: i32) -> (i32, i32) {
    %c0_i32 = arith.constant 0 : i32
    %c0_i32_0 = arith.constant 0 : i32
    %c0_i32_1 = arith.constant 0 : i32
    return %c0_i32, %c0_i32_0 : i32, i32
  }
  func.func @transform_3(%arg0: i32) -> (i32, i32, i32) {
    %c0_i32 = arith.constant 0 : i32
    %c0_i32_0 = arith.constant 0 : i32
    %c0_i32_1 = arith.constant 0 : i32
    return %arg0, %c0_i32, %c0_i32_0 : i32, i32, i32
  }
  func.func @transform_4(%arg0: i32) -> (i32, i32, i32) {
    %c0_i32 = arith.constant 0 : i32
    %c0_i32_0 = arith.constant 0 : i32
    %c0_i32_1 = arith.constant 0 : i32
    return %arg0, %c0_i32, %c0_i32_0 : i32, i32, i32
  }
  func.func @transform_5(%arg0: i32) -> (i32, i32, i32) {
    %c0_i32 = arith.constant 0 : i32
    %c0_i32_0 = arith.constant 0 : i32
    %c0_i32_1 = arith.constant 0 : i32
    return %arg0, %c0_i32, %c0_i32_0 : i32, i32, i32
  }
}

</mosaic_0001>

<bundles_post_ra>
// kernel: unet_down_forward.3
= control target key start
LH: loop header
LB: loop body
LE: loop exit
PB: predicated region body
PF: predicated region fallthrough
CT: control target
= control target key end

     0   :  { %s369_s12 = smov 0   ;;  %s416_s0 = inlined_call_operand.vmem [shape: bf16[2,32,128], index: 0, kind: input, shape index: {}]   ;;  %s417_s1 = inlined_call_operand.vmem [shape: f32[32,1], index: 1, kind: input, shape index: {}]   ;;  %s418_s2 = inlined_call_operand.vmem [shape: f32[32,1], index: 2, kind: input, shape index: {}]   ;;  %s419_s3 = inlined_call_operand.vmem [shape: f32[2,32,128], index: 3, kind: output, shape index: {}]  }
   0x1 LB: > { %s306_s13 = sadd.s32 4294967295, %s346_s12   ;;  %p310_p0 = scmp.ge.s32.totalorder %s346_s12, 1  ;;  %s346_s12 = sphi %s369_s12, %s13_s12  }
   0x2   : > { %p137_p1 = scmp.lt.s32.totalorder %s346_s12, 3 }
   0x4   : > { %p138_p2 = pnand %p310_p0, %p137_p1 }
   0x5   : > { %p161_p3 = scmp.lt.s32.totalorder (!%p138_p2), %s306_s13, 1 }
   0x6   : > { %141 = sbr.rel (%p138_p2) target bundleno = 151 (0x97), region = 32 }
   0xb   : > { %v181_v0 = vld [vmem:[%s417_s1 + $0x10] sm:$0xff]  ;;  %v179_v1 = vld [vmem:[%s417_s1] sm:$0xff]  ;;  %v348_v2 = vmov 0   ;;  %v182_v4 = vld [vmem:[%s417_s1 + $0x18] sm:$0xff]  ;;  %s421_s13 = smov (!%p161_p3, %s306_s13), 1 }
   0xc   : > { %338 = vset.pattern.permute.xlu1 %v348_v2  ;;  %337 = vset.pattern.permute.xlu0 %v348_v2  ;;  %v207_v3 = vld [vmem:[%s418_s2] sm:$0xff]  ;;  %v180_v5 = vld [vmem:[%s417_s1 + $0x8] sm:$0xff]  ;;  %v210_v7 = vld [vmem:[%s418_s2 + $0x18] sm:$0xff]  ;;  %s317_s30 = sshll.u32 %s421_s13, 4  ;;  %s318_s7 = sshll.u32 %s421_s13, 5 }
   0xd   : > { %195 = vperm.xlu1 %338, %v181_v0   ;;  %185 = vperm.xlu0 %337, %v179_v1   ;;  %v208_v6 = vld [vmem:[%s418_s2 + $0x8] sm:$0xff]  ;;  %v209_v8 = vld [vmem:[%s418_s2 + $0x10] sm:$0xff]  ;;  %s165_s6 = scalar_lea.vmem %s416_s0, %s317_s30  ;;  %s407_s10 = scalar_lea.vmem %s419_s3, %s318_s7 }
   0xe   : > { %339 = vset.pattern.permute.xlu2 %v348_v2  ;;  %v320_v9 = vld [vmem:[%s165_s6] sm:$0xff]   ;;  %v327_v19 = vld [vmem:[%s165_s6 + $0x8] sm:$0xff]  }
   0xf   : > { %213 = vperm.xlu2 %339, %v207_v3   ;;  %v321_v10 = vunpack.c.l.bf16 %v320_v9  ;;  %v322_v17 = vunpack.c.h.bf16 %v320_v9  ;;  %v325_v24 = vunpack.c.l.bf16 %v327_v19  ;;  %v326_v25 = vunpack.c.h.bf16 %v327_v19 }
  0x15   : > { %200 = vperm.xlu1 %338, %v182_v4   ;;  %190 = vperm.xlu0 %337, %v180_v5  }
  0x17   : > { %218 = vperm.xlu2 %339, %v208_v6  }
  0x1d   : > { %228 = vperm.xlu1 %338, %v210_v7   ;;  %223 = vperm.xlu0 %337, %v209_v8  }
  0x69   : > { %v214_v11 = vpop.permute.xlu2 %213 }
  0x71   : > { %v219_v23 = vpop.permute.xlu2 %218 }
  0x7f   : > { %v196_v12 = vpop.permute.xlu1 %195  ;;  %v186_v13 = vpop.permute.xlu0 %185 }
  0x80   : > { %v203_v14 = vmul.f32 %v321_v10, %v186_v13  ;;  %v205_v28 = vmul.f32 %v325_v24, %v196_v12 }
  0x82   : > { %v231_v15 = vadd.f32 %v214_v11, %v203_v14 }
  0x84   : > { %vm235_vm0 = vcmp.ge.f32.partialorder %v231_v15, 0.0  ;;  %v239_v16 = vmul.f32 0.2, %v231_v15 }
  0x86   : > { %v243_v18 = vsel %vm235_vm0, %v231_v15, %v239_v16 }
  0x87   : > { %247 = vst [vmem:[%s407_s10] sm:$0xff] %v243_v18  ;;  %v201_v20 = vpop.permute.xlu1 %200  ;;  %v191_v21 = vpop.permute.xlu0 %190 }
  0x88   : > { %v204_v22 = vmul.f32 %v322_v17, %v191_v21  ;;  %v206_v29 = vmul.f32 %v326_v25, %v201_v20 }
  0x8a   : > { %v232_v26 = vadd.f32 %v219_v23, %v204_v22 }
  0x8c   : > { %vm236_vm1 = vcmp.ge.f32.partialorder %v232_v26, 0.0  ;;  %v240_v27 = vmul.f32 0.2, %v232_v26 }
  0x8e   : > { %v244_v30 = vsel %vm236_vm1, %v232_v26, %v240_v27 }
  0x8f   : > { %248 = vst [vmem:[%s407_s10 + $0x8] sm:$0xff] %v244_v30  ;;  %v229_v31 = vpop.permute.xlu1 %228  ;;  %v224_v32 = vpop.permute.xlu0 %223 }
  0x90   : > { %v234_v33 = vadd.f32 %v229_v31, %v206_v29  ;;  %v233_v34 = vadd.f32 %v224_v32, %v205_v28 }
  0x92   : > { %vm238_vm2 = vcmp.ge.f32.partialorder %v234_v33, 0.0  ;;  %v242_v35 = vmul.f32 0.2, %v234_v33  ;;  %vm237_vm3 = vcmp.ge.f32.partialorder %v233_v34, 0.0  ;;  %v241_v36 = vmul.f32 0.2, %v233_v34 }
  0x94   : > { %v246_v37 = vsel %vm238_vm2, %v234_v33, %v242_v35  ;;  %v245_v38 = vsel %vm237_vm3, %v233_v34, %v241_v36 }
  0x95   : > { %250 = vst [vmem:[%s407_s10 + $0x18] sm:$0xff] %v246_v37 }
  0x96   : > { %249 = vst [vmem:[%s407_s10 + $0x10] sm:$0xff] %v245_v38 }
  0x97 PF: > { %s13_s12 = sadd.s32 1, %s346_s12  }
  0x98   : > { %p10_p4 = scmp.ge.s32.totalorder %s13_s12, 4  }
  0x9a   :  { %12 = sbr.rel (!%p10_p4) target bundleno = 1 (0x1), region = 62 }

// kernel: unet_down_forward.2
= control target key start
LH: loop header
LB: loop body
LE: loop exit
PB: predicated region body
PF: predicated region fallthrough
CT: control target
= control target key end

     0   :  { %s1630_s18 = smov 0   ;;  %s1882_s0 = inlined_call_operand.vmem [shape: bf16[16,32,4], index: 0, kind: input, shape index: {}]   ;;  %s1883_s1 = inlined_call_operand.vmem [shape: bf16[2,4,4,256], index: 1, kind: input, shape index: {}]   ;;  %s1884_s2 = inlined_call_operand.vmem [shape: f32[1,128], index: 2, kind: input, shape index: {}]   ;;  %s1885_s3 = inlined_call_operand.vmem [shape: bf16[2,32,128], index: 3, kind: output, shape index: {0}]   ;;  %s1886_s4 = inlined_call_operand.vmem [shape: f32[2,32,1], index: 4, kind: output, shape index: {1}]   ;;  %s1887_s5 = inlined_call_operand.vmem [shape: f32[2,32,1], index: 5, kind: output, shape index: {2}]  }
   0x1 LB: > { %s1292_s19 = sadd.s32 4294967295, %s1595_s18   ;;  %p1296_p0 = scmp.ge.s32.totalorder %s1595_s18, 1  ;;  %s1595_s18 = sphi %s1630_s18, %s16_s18  }
   0x2   : > { %p192_p1 = scmp.lt.s32.totalorder %s1595_s18, 3 }
   0x4   : > { %p193_p2 = pnand %p1296_p0, %p192_p1 }
   0x5   : > { %p230_p3 = scmp.lt.s32.totalorder (!%p193_p2), %s1292_s19, 1  ;;  %s1597_s24 = smov (!%p193_p2), 127  }
   0x6   : > { %196 = sbr.rel (%p193_p2) target bundleno = 542 (0x21e), region = 32  ;;  %s1598_s25 = smov (!%p193_p2), 119  }
   0x7   : > { %s1599_s26 = smov (!%p193_p2), 118  }
   0xb   : > { %s1889_s19 = smov (!%p230_p3, %s1292_s19), 1  ;;  %vm290_vm0 = vcmask 1041408   ;;  %v1534_v29 = vld [vmem:[%s1882_s0] sm:$0xff]  ;;  %vm283_vm1 = vcmask 31744   ;;  %vm432_vm2 = vcmask 965632   ;;  %v1535_v31 = vld [vmem:[%s1882_s0 + $0x8] sm:$0xff] }
   0xc   : > { %s1530_s20 = sshll.u32 %s1889_s19, 4  ;;  %v1540_v36 = vld [vmem:[%s1882_s0 + $0xc0] sm:$0xff]  ;;  %vm281_vm3 = vcmask 1039360   ;;  %vm374_vm4 = vcmask 973824   ;;  %v1541_v47 = vld [vmem:[%s1882_s0 + $0xc8] sm:$0xff]  ;;  %v1542_v63 = vld [vmem:[%s1882_s0 + $0x10] sm:$0xff] }
   0xd   : > { %s1646_s23 = scalar_lea.vmem %s1883_s1, %s1530_s20  ;;  %v1536_v42 = vld [vmem:[%s1882_s0 + $0x40] sm:$0xff]  ;;  %v1537_v48 = vld [vmem:[%s1882_s0 + $0x48] sm:$0xff]  ;;  %s239_s29 = scalar_lea.vmem %s1885_s3, %s1530_s20  ;;  %vm1142_vm5 = vcmask 7168  }
   0xe   : > { %v1649_v0 = vld [vmem:[%s1646_s23] sm:$0xf]  ;;  %v1658_v5 = vld [vmem:[%s1646_s23 + $0x4] sm:$0xf]  ;;  %v1669_v12 = vld [vmem:[%s1646_s23 + $0x8] sm:$0xf] }
   0xf   : > { %272 = vst [vmem:[#allocation1] ss:$4 sm:$0xff] %v1649_v0  ;;  %v1681_v19 = vld [vmem:[%s1646_s23 + $0xc] sm:$0xf]  ;;  %v329_v28 = vsel %vm290_vm0, %v1649_v0, 0  ;;  %v490_v40 = vsel %vm290_vm0, %v1658_v5, 0 }
  0x10   : > { %338 = vmatpush.bf16.msra.mxu1 %v329_v28  ;;  %v1538_v46 = vld [vmem:[%s1882_s0 + $0x80] sm:$0xff]  ;;  %v1539_v54 = vld [vmem:[%s1882_s0 + $0x88] sm:$0xff]  ;;  %v710_v56 = vsel %vm290_vm0, %v1669_v12, 0  ;;  %s1532_s20 = sshll.u32 %s1889_s19, 5 }
  0x11   : > { %s244_s7 = scalar_lea.vmem %s1886_s4, %s1532_s20  ;;  %s249_s10 = scalar_lea.vmem %s1887_s5, %s1532_s20 }
  0x13   : > { %1327 = vmatmul.msk.bf16.vlgmr.msra.gmra.mxu1 %vm283_vm1, %v1534_v29 }
  0x16   : > { %v273_v1 = vld.sshfl [vmem:[#allocation1] sm:$0xff pattern:$0x73625140]  ;;  %v275_v2 = vld.sshfl [vmem:[#allocation1 + $0x8] sm:$0xff pattern:$0x73625140] }
  0x17   : > { %277 = vrot.lane.b32.xlu1 %v273_v1, %s1597_s24  ;;  %365 = vst [vmem:[#allocation1] ss:$4 sm:$0xff] %v1649_v0  ;;  %v1548_v1 = vld [vmem:[%s1882_s0 + $0xd0] sm:$0xff] }
  0x1e   : > { %v366_v3 = vld.sshfl [vmem:[#allocation1] sm:$0xff pattern:$0x73625140]  ;;  %v368_v4 = vld.sshfl [vmem:[#allocation1 + $0x8] sm:$0xff pattern:$0x73625140] }
  0x1f   : > { %279 = vrot.lane.b32.xlu1 %v275_v2, %s1597_s24  ;;  %370 = vrot.lane.b32.xlu0 %v366_v3, %s1598_s25  ;;  %423 = vst [vmem:[#allocation1] ss:$4 sm:$0xff] %v1649_v0  ;;  %v1544_v0 = vld [vmem:[%s1882_s0 + $0x50] sm:$0xff] }
  0x20   : > { %v1546_v2 = vld [vmem:[%s1882_s0 + $0x90] sm:$0xff] }
  0x23   : > { %1328 = vmatmul.msk.bf16.gmra.mxu1 %vm283_vm1, %v1535_v31 }
  0x26   : > { %v424_v6 = vld.sshfl [vmem:[#allocation1] sm:$0xff pattern:$0x73625140]  ;;  %v426_v7 = vld.sshfl [vmem:[#allocation1 + $0x8] sm:$0xff pattern:$0x73625140] }
  0x27   : > { %372 = vrot.lane.b32.xlu0 %v368_v4, %s1598_s25  ;;  %530 = vst [vmem:[#allocation1] ss:$4 sm:$0xff] %v1658_v5  ;;  %428 = vrot.lane.b32.xlu2 %v424_v6, %s1599_s26 }
  0x2e   : > { %v531_v8 = vld.sshfl [vmem:[#allocation1] sm:$0xff pattern:$0x73625140]  ;;  %v533_v9 = vld.sshfl [vmem:[#allocation1 + $0x8] sm:$0xff pattern:$0x73625140] }
  0x2f   : > { %587 = vst [vmem:[#allocation1] ss:$4 sm:$0xff] %v1658_v5  ;;  %430 = vrot.lane.b32.xlu2 %v426_v7, %s1599_s26  ;;  %v1543_v7 = vld [vmem:[%s1882_s0 + $0x18] sm:$0xff] }
  0x36   : > { %v590_v10 = vld.sshfl [vmem:[#allocation1 + $0x8] sm:$0xff pattern:$0x73625140]  ;;  %v588_v11 = vld.sshfl [vmem:[#allocation1] sm:$0xff pattern:$0x73625140] }
  0x37   : > { %594 = vrot.lane.b32.xlu1 %v590_v10, %s1598_s25  ;;  %592 = vrot.lane.b32.xlu0 %v588_v11, %s1598_s25  ;;  %644 = vst [vmem:[#allocation1] ss:$4 sm:$0xff] %v1658_v5  ;;  %v1549_v10 = vld [vmem:[%s1882_s0 + $0xd8] sm:$0xff] }
  0x3e   : > { %v647_v13 = vld.sshfl [vmem:[#allocation1 + $0x8] sm:$0xff pattern:$0x73625140]  ;;  %v645_v14 = vld.sshfl [vmem:[#allocation1] sm:$0xff pattern:$0x73625140] }
  0x3f   : > { %651 = vrot.lane.b32.xlu0 %v647_v13, %s1599_s26  ;;  %535 = vrot.lane.b32.xlu1 %v531_v8, %s1597_s24  ;;  %750 = vst [vmem:[#allocation1] ss:$4 sm:$0xff] %v1669_v12  ;;  %v1545_v8 = vld [vmem:[%s1882_s0 + $0x58] sm:$0xff] }
  0x40   : > { %649 = vrot.lane.b32.xlu2 %v645_v14, %s1599_s26 }
  0x46   : > { %v751_v15 = vld.sshfl [vmem:[#allocation1] sm:$0xff pattern:$0x73625140]  ;;  %v753_v16 = vld.sshfl [vmem:[#allocation1 + $0x8] sm:$0xff pattern:$0x73625140] }
  0x47   : > { %807 = vst [vmem:[#allocation1] ss:$4 sm:$0xff] %v1669_v12 }
  0x48   : > { %537 = vrot.lane.b32.xlu2 %v533_v9, %s1597_s24 }
  0x4e   : > { %v808_v17 = vld.sshfl [vmem:[#allocation1] sm:$0xff pattern:$0x73625140]  ;;  %v810_v18 = vld.sshfl [vmem:[#allocation1 + $0x8] sm:$0xff pattern:$0x73625140] }
  0x4f   : > { %812 = vrot.lane.b32.xlu0 %v808_v17, %s1598_s25  ;;  %814 = vrot.lane.b32.xlu1 %v810_v18, %s1598_s25  ;;  %864 = vst [vmem:[#allocation1] ss:$4 sm:$0xff] %v1669_v12  ;;  %v1547_v17 = vld [vmem:[%s1882_s0 + $0x98] sm:$0xff] }
  0x56   : > { %v867_v20 = vld.sshfl [vmem:[#allocation1 + $0x8] sm:$0xff pattern:$0x73625140]  ;;  %v865_v21 = vld.sshfl [vmem:[#allocation1] sm:$0xff pattern:$0x73625140] }
  0x57   : > { %871 = vrot.lane.b32.xlu0 %v867_v20, %s1599_s26  ;;  %755 = vrot.lane.b32.xlu1 %v751_v15, %s1597_s24  ;;  %970 = vst [vmem:[#allocation1] ss:$4 sm:$0xff] %v1681_v19  ;;  %v930_v20 = vsel %vm290_vm0, %v1681_v19, 0 }
  0x58   : > { %869 = vrot.lane.b32.xlu2 %v865_v21, %s1599_s26  ;;  %v1550_v21 = vld [vmem:[%s1882_s0 + $0x20] sm:$0xff] }
  0x5e   : > { %v971_v22 = vld.sshfl [vmem:[#allocation1] sm:$0xff pattern:$0x73625140]  ;;  %v973_v23 = vld.sshfl [vmem:[#allocation1 + $0x8] sm:$0xff pattern:$0x73625140] }
  0x5f   : > { %1027 = vst [vmem:[#allocation1] ss:$4 sm:$0xff] %v1681_v19 }
  0x60   : > { %757 = vrot.lane.b32.xlu2 %v753_v16, %s1597_s24 }
  0x66   : > { %v1028_v24 = vld.sshfl [vmem:[#allocation1] sm:$0xff pattern:$0x73625140]  ;;  %v1030_v25 = vld.sshfl [vmem:[#allocation1 + $0x8] sm:$0xff pattern:$0x73625140] }
  0x67   : > { %1032 = vrot.lane.b32.xlu0 %v1028_v24, %s1598_s25  ;;  %1034 = vrot.lane.b32.xlu1 %v1030_v25, %s1598_s25  ;;  %1084 = vst [vmem:[#allocation1] ss:$4 sm:$0xff] %v1681_v19 }
  0x6e   : > { %v1087_v26 = vld.sshfl [vmem:[#allocation1 + $0x8] sm:$0xff pattern:$0x73625140]  ;;  %v1085_v27 = vld.sshfl [vmem:[#allocation1] sm:$0xff pattern:$0x73625140] }
  0x6f   : > { %1091 = vrot.lane.b32.xlu0 %v1087_v26, %s1599_s26  ;;  %975 = vrot.lane.b32.xlu1 %v971_v22, %s1597_s24  ;;  %v1552_v22 = vld [vmem:[%s1882_s0 + $0x60] sm:$0xff] }
  0x70   : > { %1089 = vrot.lane.b32.xlu2 %v1085_v27, %s1599_s26  ;;  %v1554_v27 = vld [vmem:[%s1882_s0 + $0xa0] sm:$0xff] }
  0x78   : > { %977 = vrot.lane.b32.xlu2 %v973_v23, %s1597_s24  ;;  %v1556_v23 = vld [vmem:[%s1882_s0 + $0xe0] sm:$0xff] }
  0x81   : > { %v429_v30 = vpop.permute.xlu2 %428 }
  0x89   : > { %v278_v32 = vpop.permute.xlu1 %277  ;;  %v431_v33 = vpop.permute.xlu2 %430 }
  0x8a   : > { %v433_v34 = vsel %vm432_vm2, %v429_v30, %v431_v33 }
  0x8b   : > { %v441_v35 = vsel %vm290_vm0, %v433_v34, 0  ;;  %v1551_v34 = vld [vmem:[%s1882_s0 + $0x28] sm:$0xff] }
  0x8c   : > { %450 = vmatpush.bf16.msra.mxu3 %v441_v35  ;;  %v1553_v35 = vld [vmem:[%s1882_s0 + $0x68] sm:$0xff] }
  0x8f   : > { %1355 = vmatmul.msk.bf16.vlgmr.msra.gmra.mxu3 %vm283_vm1, %v1540_v36 }
  0x91   : > { %v280_v37 = vpop.permute.xlu1 %279  ;;  %v371_v38 = vpop.permute.xlu0 %370 }
  0x92   : > { %v282_v39 = vsel %vm281_vm3, %v278_v32, %v280_v37 }
  0x93   : > { %v292_v41 = vsel %vm290_vm0, %v282_v39, 0  ;;  %v1555_v39 = vld [vmem:[%s1882_s0 + $0xa8] sm:$0xff] }
  0x94   : > { %301 = vmatpush.bf16.msra.mxu0 %v292_v41  ;;  %v1560_v41 = vld [vmem:[%s1882_s0 + $0x70] sm:$0xff] }
  0x97   : > { %1317 = vmatmul.msk.bf16.vlgmr.msra.gmra.mxu0 %vm283_vm1, %v1536_v42  ;;  %v1564_v42 = vld [vmem:[%s1882_s0 + $0xf0] sm:$0xff] }
  0x98   : > { %499 = vmatpush.bf16.msrb.mxu0 %v490_v40  ;;  %v1558_v40 = vld [vmem:[%s1882_s0 + $0x30] sm:$0xff] }
  0x99   : > { %v373_v43 = vpop.permute.xlu0 %372 }
  0x9a   : > { %v375_v44 = vsel %vm374_vm4, %v371_v38, %v373_v43  ;;  %v650_v49 = vpop.permute.xlu2 %649  ;;  %v1557_v38 = vld [vmem:[%s1882_s0 + $0xe8] sm:$0xff]  ;;  %v1562_v43 = vld [vmem:[%s1882_s0 + $0xb0] sm:$0xff] }
  0x9b   : > { %v383_v45 = vsel %vm290_vm0, %v375_v44, 0  ;;  %v1559_v44 = vld [vmem:[%s1882_s0 + $0x38] sm:$0xff] }
  0x9c   : > { %392 = vmatpush.bf16.msra.mxu2 %v383_v45  ;;  %719 = vmatpush.bf16.msra.mxu0 %v710_v56  ;;  %v1561_v45 = vld [vmem:[%s1882_s0 + $0x78] sm:$0xff] }
  0x9f   : > { %1341 = vmatmul.msk.bf16.vlgmr.msra.gmra.mxu2 %vm283_vm1, %v1538_v46  ;;  %1356 = vmatmul.msk.bf16.gmra.mxu3 %vm283_vm1, %v1541_v47  ;;  %v1565_v46 = vld [vmem:[%s1882_s0 + $0xf8] sm:$0xff] }
  0xa0   : > { %v1563_v47 = vld [vmem:[%s1882_s0 + $0xb8] sm:$0xff] }
  0xa2   : > { %v538_v55 = vpop.permute.xlu2 %537 }
  0xa7   : > { %1318 = vmatmul.msk.bf16.gmra.mxu0 %vm283_vm1, %v1537_v48  ;;  %v340_v48 = vpop.f32.mrf.mxu1 }
  0xa9   : > { %v595_v50 = vpop.permute.xlu1 %594  ;;  %v593_v51 = vpop.permute.xlu0 %592 }
  0xaa   : > { %v596_v52 = vsel %vm374_vm4, %v593_v51, %v595_v50 }
  0xab   : > { %v604_v53 = vsel %vm290_vm0, %v596_v52, 0 }
  0xac   : > { %613 = vmatpush.bf16.msrb.mxu2 %v604_v53 }
  0xaf   : > { %1342 = vmatmul.msk.bf16.gmra.mxu2 %vm283_vm1, %v1539_v54  ;;  %v342_v52 = vpop.f32.mrf.mxu1 }
  0xb1   : > { %v652_v57 = vpop.permute.xlu0 %651  ;;  %v536_v58 = vpop.permute.xlu1 %535 }
  0xb2   : > { %v653_v59 = vsel %vm432_vm2, %v650_v49, %v652_v57  ;;  %v539_v60 = vsel %vm281_vm3, %v536_v58, %v538_v55  ;;  %v870_v3 = vpop.permute.xlu2 %869 }
  0xb3   : > { %v661_v61 = vsel %vm290_vm0, %v653_v59, 0  ;;  %v547_v62 = vsel %vm290_vm0, %v539_v60, 0 }
  0xb4   : > { %670 = vmatpush.bf16.msrb.mxu3 %v661_v61  ;;  %556 = vmatpush.bf16.msrb.mxu1 %v547_v62 }
  0xb7   : > { %1370 = vmatmul.msk.bf16.vlgmr.msrb.gmra.mxu0 %vm283_vm1, %v1542_v63  ;;  %1384 = vmatmul.msk.bf16.vlgmr.msrb.gmra.mxu1 %vm283_vm1, %v1544_v0  ;;  %v345_v56 = vpop.f32.mrf.mxu1 }
  0xb8   : > { %1412 = vmatmul.msk.bf16.vlgmr.msrb.gmra.mxu3 %vm283_vm1, %v1548_v1  ;;  %939 = vmatpush.bf16.msrb.mxu0 %v930_v20 }
  0xba   : > { %v758_v11 = vpop.permute.xlu2 %757 }
  0xbf   : > { %1398 = vmatmul.msk.bf16.vlgmr.msrb.gmra.mxu2 %vm283_vm1, %v1546_v2  ;;  %v347_v0 = vpop.f32.mrf.mxu1 }
  0xc1   : > { %v813_v4 = vpop.permute.xlu0 %812  ;;  %v815_v5 = vpop.permute.xlu1 %814 }
  0xc2   : > { %v816_v6 = vsel %vm374_vm4, %v813_v4, %v815_v5 }
  0xc3   : > { %v824_v9 = vsel %vm290_vm0, %v816_v6, 0 }
  0xc4   : > { %833 = vmatpush.bf16.msra.mxu2 %v824_v9 }
  0xc7   : > { %1371 = vmatmul.msk.bf16.gmra.mxu0 %vm283_vm1, %v1543_v7  ;;  %1385 = vmatmul.msk.bf16.gmra.mxu1 %vm283_vm1, %v1545_v8 }
  0xc8   : > { %1413 = vmatmul.msk.bf16.gmra.mxu3 %vm283_vm1, %v1549_v10 }
  0xc9   : > { %v872_v12 = vpop.permute.xlu0 %871  ;;  %v756_v13 = vpop.permute.xlu1 %755 }
  0xca   : > { %v873_v14 = vsel %vm432_vm2, %v870_v3, %v872_v12  ;;  %v759_v15 = vsel %vm281_vm3, %v756_v13, %v758_v11  ;;  %v1090_v24 = vpop.permute.xlu2 %1089 }
  0xcb   : > { %v881_v16 = vsel %vm290_vm0, %v873_v14, 0  ;;  %v767_v18 = vsel %vm290_vm0, %v759_v15, 0 }
  0xcc   : > { %890 = vmatpush.bf16.msra.mxu3 %v881_v16  ;;  %776 = vmatpush.bf16.msra.mxu1 %v767_v18 }
  0xcf   : > { %1399 = vmatmul.msk.bf16.gmra.mxu2 %vm283_vm1, %v1547_v17 }
  0xd2   : > { %v978_v29 = vpop.permute.xlu2 %977 }
  0xd7   : > { %1427 = vmatmul.msk.bf16.vlgmr.msra.gmra.mxu0 %vm283_vm1, %v1550_v21  ;;  %1441 = vmatmul.msk.bf16.vlgmr.msra.gmra.mxu1 %vm283_vm1, %v1552_v22 }
  0xd8   : > { %1469 = vmatmul.msk.bf16.vlgmr.msra.gmra.mxu3 %vm283_vm1, %v1556_v23 }
  0xd9   : > { %v1033_v19 = vpop.permute.xlu0 %1032  ;;  %v1035_v25 = vpop.permute.xlu1 %1034 }
  0xda   : > { %v1036_v26 = vsel %vm374_vm4, %v1033_v19, %v1035_v25 }
  0xdb   : > { %v1044_v28 = vsel %vm290_vm0, %v1036_v26, 0 }
  0xdc   : > { %1053 = vmatpush.bf16.msrb.mxu2 %v1044_v28 }
  0xdf   : > { %1455 = vmatmul.msk.bf16.vlgmr.msra.gmra.mxu2 %vm283_vm1, %v1554_v27 }
  0xe1   : > { %v1092_v30 = vpop.permute.xlu0 %1091  ;;  %v976_v31 = vpop.permute.xlu1 %975 }
  0xe2   : > { %v1093_v32 = vsel %vm432_vm2, %v1090_v24, %v1092_v30  ;;  %v979_v33 = vsel %vm281_vm3, %v976_v31, %v978_v29 }
  0xe3   : > { %v1101_v36 = vsel %vm290_vm0, %v1093_v32, 0  ;;  %v987_v37 = vsel %vm290_vm0, %v979_v33, 0 }
  0xe4   : > { %1110 = vmatpush.bf16.msrb.mxu3 %v1101_v36  ;;  %996 = vmatpush.bf16.msrb.mxu1 %v987_v37 }
  0xe7   : > { %1428 = vmatmul.msk.bf16.gmra.mxu0 %vm283_vm1, %v1551_v34  ;;  %1442 = vmatmul.msk.bf16.gmra.mxu1 %vm283_vm1, %v1553_v35 }
  0xe8   : > { %1470 = vmatmul.msk.bf16.gmra.mxu3 %vm283_vm1, %v1557_v38 }
  0xef   : > { %1456 = vmatmul.msk.bf16.gmra.mxu2 %vm283_vm1, %v1555_v39 }
  0xf7   : > { %1484 = vmatmul.msk.bf16.vlgmr.msrb.gmra.mxu0 %vm283_vm1, %v1558_v40  ;;  %1498 = vmatmul.msk.bf16.vlgmr.msrb.gmra.mxu1 %vm283_vm1, %v1560_v41 }
  0xf8   : > { %1526 = vmatmul.msk.bf16.vlgmr.msrb.gmra.mxu3 %vm283_vm1, %v1564_v42 }
  0xff   : > { %1512 = vmatmul.msk.bf16.vlgmr.msrb.gmra.mxu2 %vm283_vm1, %v1562_v43 }
 0x107   : > { %1485 = vmatmul.msk.bf16.gmra.mxu0 %vm283_vm1, %v1559_v44  ;;  %1499 = vmatmul.msk.bf16.gmra.mxu1 %vm283_vm1, %v1561_v45 }
 0x108   : > { %1527 = vmatmul.msk.bf16.gmra.mxu3 %vm283_vm1, %v1565_v46 }
 0x10f   : > { %1513 = vmatmul.msk.bf16.gmra.mxu2 %vm283_vm1, %v1563_v47 }
 0x112   : > { %v452_v49 = vpop.f32.mrf.mxu3 }
 0x114   : > { %v303_v50 = vpop.f32.mrf.mxu0 }
 0x115   : > { %v341_v51 = vadd.f32 %v340_v48, %v303_v50 }
 0x11a   : > { %v454_v55 = vpop.f32.mrf.mxu3 }
 0x11c   : > { %v305_v53 = vpop.f32.mrf.mxu0 }
 0x11d   : > { %v343_v54 = vadd.f32 %v342_v52, %v305_v53 }
 0x122   : > { %v394_v57 = vpop.f32.mrf.mxu2  ;;  %v457_v62 = vpop.f32.mrf.mxu3 }
 0x123   : > { %v404_v58 = vadd.f32 %v394_v57, %v341_v51 }
 0x124   : > { %v308_v59 = vpop.f32.mrf.mxu0 }
 0x125   : > { %v462_v60 = vadd.f32 %v452_v49, %v404_v58  ;;  %v346_v61 = vadd.f32 %v345_v56, %v308_v59 }
 0x12a   : > { %v396_v63 = vpop.f32.mrf.mxu2  ;;  %v459_v5 = vpop.f32.mrf.mxu3 }
 0x12b   : > { %v405_v1 = vadd.f32 %v396_v63, %v343_v54 }
 0x12c   : > { %v310_v2 = vpop.f32.mrf.mxu0 }
 0x12d   : > { %v463_v3 = vadd.f32 %v454_v55, %v405_v1  ;;  %v348_v4 = vadd.f32 %v347_v0, %v310_v2 }
 0x132   : > { %v399_v6 = vpop.f32.mrf.mxu2 }
 0x133   : > { %v406_v7 = vadd.f32 %v399_v6, %v346_v61 }
 0x134   : > { %v501_v8 = vpop.f32.mrf.mxu0  ;;  %v558_v9 = vpop.f32.mrf.mxu1 }
 0x135   : > { %v464_v10 = vadd.f32 %v457_v62, %v406_v7  ;;  %v511_v37 = vadd.f32 %v501_v8, %v462_v60 }
 0x137   : > { %v568_v38 = vadd.f32 %v558_v9, %v511_v37 }
 0x13a   : > { %v401_v11 = vpop.f32.mrf.mxu2 }
 0x13b   : > { %v407_v12 = vadd.f32 %v401_v11, %v348_v4  ;;  %v672_v13 = vpop.f32.mrf.mxu3 }
 0x13c   : > { %v503_v14 = vpop.f32.mrf.mxu0  ;;  %v560_v15 = vpop.f32.mrf.mxu1 }
 0x13d   : > { %v465_v16 = vadd.f32 %v459_v5, %v407_v12  ;;  %v512_v43 = vadd.f32 %v503_v14, %v463_v3 }
 0x13f   : > { %v569_v46 = vadd.f32 %v560_v15, %v512_v43 }
 0x142   : > { %v615_v17 = vpop.f32.mrf.mxu2 }
 0x143   : > { %v674_v18 = vpop.f32.mrf.mxu3  ;;  %v625_v40 = vadd.f32 %v615_v17, %v568_v38 }
 0x144   : > { %v506_v20 = vpop.f32.mrf.mxu0  ;;  %v563_v21 = vpop.f32.mrf.mxu1 }
 0x145   : > { %v682_v45 = vadd.f32 %v672_v13, %v625_v40  ;;  %v513_v52 = vadd.f32 %v506_v20, %v464_v10  ;;  %v1588_v13 = vld [vmem:[%s1884_s2] ss:$0 sm:$0xff] }
 0x147   : > { %v570_v57 = vadd.f32 %v563_v21, %v513_v52 }
 0x14a   : > { %v617_v22 = vpop.f32.mrf.mxu2 }
 0x14b   : > { %v677_v23 = vpop.f32.mrf.mxu3  ;;  %v626_v49 = vadd.f32 %v617_v22, %v569_v46 }
 0x14c   : > { %v508_v24 = vpop.f32.mrf.mxu0  ;;  %v565_v19 = vpop.f32.mrf.mxu1 }
 0x14d   : > { %v683_v54 = vadd.f32 %v674_v18, %v626_v49  ;;  %v514_v62 = vadd.f32 %v508_v24, %v465_v16 }
 0x14f   : > { %v571_v5 = vadd.f32 %v565_v19, %v514_v62 }
 0x152   : > { %v620_v25 = vpop.f32.mrf.mxu2 }
 0x153   : > { %v679_v26 = vpop.f32.mrf.mxu3  ;;  %v627_v60 = vadd.f32 %v620_v25, %v570_v57 }
 0x154   : > { %v721_v27 = vpop.f32.mrf.mxu0  ;;  %v778_v28 = vpop.f32.mrf.mxu1 }
 0x155   : > { %v731_v47 = vadd.f32 %v721_v27, %v682_v45  ;;  %v684_v3 = vadd.f32 %v677_v23, %v627_v60 }
 0x157   : > { %v788_v53 = vadd.f32 %v778_v28, %v731_v47 }
 0x15a   : > { %v622_v29 = vpop.f32.mrf.mxu2 }
 0x15b   : > { %v892_v30 = vpop.f32.mrf.mxu3  ;;  %v628_v10 = vadd.f32 %v622_v29, %v571_v5 }
 0x15c   : > { %v723_v31 = vpop.f32.mrf.mxu0  ;;  %v780_v32 = vpop.f32.mrf.mxu1 }
 0x15d   : > { %v732_v58 = vadd.f32 %v723_v31, %v683_v54  ;;  %v685_v17 = vadd.f32 %v679_v26, %v628_v10 }
 0x15f   : > { %v789_v63 = vadd.f32 %v780_v32, %v732_v58 }
 0x162   : > { %v835_v33 = vpop.f32.mrf.mxu2 }
 0x163   : > { %v894_v34 = vpop.f32.mrf.mxu3  ;;  %v845_v55 = vadd.f32 %v835_v33, %v788_v53 }
 0x164   : > { %v726_v35 = vpop.f32.mrf.mxu0  ;;  %v783_v36 = vpop.f32.mrf.mxu1 }
 0x165   : > { %v902_v61 = vadd.f32 %v892_v30, %v845_v55  ;;  %v733_v6 = vadd.f32 %v726_v35, %v684_v3 }
 0x167   : > { %v790_v14 = vadd.f32 %v783_v36, %v733_v6 }
 0x16a   : > { %v837_v39 = vpop.f32.mrf.mxu2 }
 0x16b   : > { %v897_v41 = vpop.f32.mrf.mxu3  ;;  %v846_v4 = vadd.f32 %v837_v39, %v789_v63 }
 0x16c   : > { %v728_v42 = vpop.f32.mrf.mxu0  ;;  %v785_v44 = vpop.f32.mrf.mxu1 }
 0x16d   : > { %v903_v11 = vadd.f32 %v894_v34, %v846_v4  ;;  %v734_v23 = vadd.f32 %v728_v42, %v685_v17 }
 0x16f   : > { %v791_v29 = vadd.f32 %v785_v44, %v734_v23 }
 0x172   : > { %v840_v48 = vpop.f32.mrf.mxu2 }
 0x173   : > { %v899_v50 = vpop.f32.mrf.mxu3  ;;  %v847_v18 = vadd.f32 %v840_v48, %v790_v14 }
 0x174   : > { %v941_v51 = vpop.f32.mrf.mxu0  ;;  %v998_v56 = vpop.f32.mrf.mxu1 }
 0x175   : > { %v951_v0 = vadd.f32 %v941_v51, %v902_v61  ;;  %v904_v25 = vadd.f32 %v897_v41, %v847_v18 }
 0x177   : > { %v1008_v7 = vadd.f32 %v998_v56, %v951_v0 }
 0x17a   : > { %v842_v59 = vpop.f32.mrf.mxu2 }
 0x17b   : > { %v1112_v1 = vpop.f32.mrf.mxu3  ;;  %v848_v26 = vadd.f32 %v842_v59, %v791_v29 }
 0x17c   : > { %v943_v2 = vpop.f32.mrf.mxu0  ;;  %v1000_v8 = vpop.f32.mrf.mxu1 }
 0x17d   : > { %v952_v15 = vadd.f32 %v943_v2, %v903_v11  ;;  %v905_v39 = vadd.f32 %v899_v50, %v848_v26 }
 0x17f   : > { %v1009_v24 = vadd.f32 %v1000_v8, %v952_v15 }
 0x182   : > { %v1055_v9 = vpop.f32.mrf.mxu2 }
 0x183   : > { %v1065_v12 = vadd.f32 %v1055_v9, %v1008_v7  ;;  %v1114_v21 = vpop.f32.mrf.mxu3 }
 0x184   : > { %v946_v22 = vpop.f32.mrf.mxu0  ;;  %v1003_v28 = vpop.f32.mrf.mxu1 }
 0x185   : > { %v1122_v16 = vadd.f32 %v1112_v1, %v1065_v12  ;;  %v953_v30 = vadd.f32 %v946_v22, %v904_v25 }
 0x187   : > { %v1130_v20 = vmul.f32 %v1588_v13, %v1122_v16  ;;  %v1010_v35 = vadd.f32 %v1003_v28, %v953_v30 }
 0x189   : > { %1134 = vadd.xlane.f32.xlu0 %v1130_v20  ;;  %v1147_v33 = vmul.f32 %v1130_v20, %v1130_v20 }
 0x18a   : > { %v1057_v19 = vpop.f32.mrf.mxu2 }
 0x18b   : > { %v1066_v27 = vadd.f32 %v1057_v19, %v1009_v24  ;;  %v1117_v36 = vpop.f32.mrf.mxu3 }
 0x18c   : > { %v948_v37 = vpop.f32.mrf.mxu0  ;;  %v1005_v43 = vpop.f32.mrf.mxu1 }
 0x18d   : > { %v1123_v31 = vadd.f32 %v1114_v21, %v1066_v27  ;;  %v954_v41 = vadd.f32 %v948_v37, %v905_v39 }
 0x18f   : > { %v1569_v32 = vpack.c.bf16 %v1123_v31, %v1122_v16  ;;  %v1131_v34 = vmul.f32 %v1588_v13, %v1123_v31  ;;  %v1011_v46 = vadd.f32 %v1005_v43, %v954_v41 }
 0x191   : > { %1570 = vst [vmem:[%s239_s29] sm:$0xff] %v1569_v32   ;;  %1151 = vadd.xlane.f32.xlu0 %v1147_v33  ;;  %1136 = vadd.xlane.f32.xlu1 %v1131_v34  ;;  %v1148_v44 = vmul.f32 %v1131_v34, %v1131_v34 }
 0x192   : > { %v1060_v38 = vpop.f32.mrf.mxu2 }
 0x193   : > { %v1067_v40 = vadd.f32 %v1060_v38, %v1010_v35  ;;  %v1119_v49 = vpop.f32.mrf.mxu3 }
 0x195   : > { %v1124_v42 = vadd.f32 %v1117_v36, %v1067_v40 }
 0x197   : > { %v1132_v45 = vmul.f32 %v1588_v13, %v1124_v42 }
 0x199   : > { %1153 = vadd.xlane.f32.xlu1 %v1148_v44  ;;  %1138 = vadd.xlane.f32.xlu2 %v1132_v45  ;;  %v1149_v50 = vmul.f32 %v1132_v45, %v1132_v45 }
 0x19a   : > { %v1062_v47 = vpop.f32.mrf.mxu2 }
 0x19b   : > { %v1068_v48 = vadd.f32 %v1062_v47, %v1011_v46 }
 0x19d   : > { %v1125_v51 = vadd.f32 %v1119_v49, %v1068_v48 }
 0x19f   : > { %v1574_v52 = vpack.c.bf16 %v1125_v51, %v1124_v42  ;;  %v1133_v53 = vmul.f32 %v1588_v13, %v1125_v51 }
 0x1a1   : > { %1576 = vst [vmem:[%s239_s29 + $0x8] sm:$0xff] %v1574_v52   ;;  %1140 = vadd.xlane.f32.xlu2 %v1133_v53  ;;  %v1150_v54 = vmul.f32 %v1133_v53, %v1133_v53 }
 0x1a3   : > { %1157 = vadd.xlane.f32.xlu0 %v1150_v54 }
 0x1a9   : > { %1155 = vadd.xlane.f32.xlu2 %v1149_v50 }
 0x1fc   : > { %v1135_v55 = vpop.xlane.xlu0 %1134 }
 0x1fd   : > { %1143 = vst.msk [vmem:[%s244_s7] sm:$0xff] %vm1142_vm5, %v1135_v55 }
 0x204   : > { %v1152_v56 = vpop.xlane.xlu0 %1151  ;;  %v1137_v57 = vpop.xlane.xlu1 %1136 }
 0x205   : > { %1159 = vst.msk [vmem:[%s249_s10] sm:$0xff] %vm1142_vm5, %v1152_v56 }
 0x206   : > { %1144 = vst.msk [vmem:[%s244_s7 + $0x8] sm:$0xff] %vm1142_vm5, %v1137_v57 }
 0x20c   : > { %v1154_v58 = vpop.xlane.xlu1 %1153  ;;  %v1139_v59 = vpop.xlane.xlu2 %1138 }
 0x20d   : > { %1160 = vst.msk [vmem:[%s249_s10 + $0x8] sm:$0xff] %vm1142_vm5, %v1154_v58 }
 0x20e   : > { %1145 = vst.msk [vmem:[%s244_s7 + $0x10] sm:$0xff] %vm1142_vm5, %v1139_v59 }
 0x214   : > { %v1141_v60 = vpop.xlane.xlu2 %1140 }
 0x215   : > { %1146 = vst.msk [vmem:[%s244_s7 + $0x18] sm:$0xff] %vm1142_vm5, %v1141_v60 }
 0x216   : > { %v1158_v61 = vpop.xlane.xlu0 %1157 }
 0x217   : > { %1162 = vst.msk [vmem:[%s249_s10 + $0x18] sm:$0xff] %vm1142_vm5, %v1158_v61 }
 0x21c   : > { %v1156_v62 = vpop.xlane.xlu2 %1155 }
 0x21d   : > { %1161 = vst.msk [vmem:[%s249_s10 + $0x10] sm:$0xff] %vm1142_vm5, %v1156_v62 }
 0x21e PF: > { %s16_s18 = sadd.s32 1, %s1595_s18  }
 0x21f   : > { %p13_p4 = scmp.ge.s32.totalorder %s16_s18, 4  }
 0x221   :  { %15 = sbr.rel (!%p13_p4) target bundleno = 1 (0x1), region = 104 }

// kernel: unet_down_forward.3
= control target key start
LH: loop header
LB: loop body
LE: loop exit
PB: predicated region body
PF: predicated region fallthrough
CT: control target
= control target key end

     0   :  { %s369_s12 = smov 0   ;;  %s416_s0 = inlined_call_operand.vmem [shape: bf16[2,32,128], index: 0, kind: input, shape index: {}]   ;;  %s417_s1 = inlined_call_operand.vmem [shape: f32[32,1], index: 1, kind: input, shape index: {}]   ;;  %s418_s2 = inlined_call_operand.vmem [shape: f32[32,1], index: 2, kind: input, shape index: {}]   ;;  %s419_s3 = inlined_call_operand.vmem [shape: f32[2,32,128], index: 3, kind: output, shape index: {}]  }
   0x1 LB: > { %s306_s13 = sadd.s32 4294967295, %s346_s12   ;;  %p310_p0 = scmp.ge.s32.totalorder %s346_s12, 1  ;;  %s346_s12 = sphi %s369_s12, %s13_s12  }
   0x2   : > { %p137_p1 = scmp.lt.s32.totalorder %s346_s12, 3 }
   0x4   : > { %p138_p2 = pnand %p310_p0, %p137_p1 }
   0x5   : > { %p161_p3 = scmp.lt.s32.totalorder (!%p138_p2), %s306_s13, 1 }
   0x6   : > { %141 = sbr.rel (%p138_p2) target bundleno = 151 (0x97), region = 32 }
   0xb   : > { %v181_v0 = vld [vmem:[%s417_s1 + $0x10] sm:$0xff]  ;;  %v179_v1 = vld [vmem:[%s417_s1] sm:$0xff]  ;;  %v348_v2 = vmov 0   ;;  %v182_v4 = vld [vmem:[%s417_s1 + $0x18] sm:$0xff]  ;;  %s421_s13 = smov (!%p161_p3, %s306_s13), 1 }
   0xc   : > { %338 = vset.pattern.permute.xlu1 %v348_v2  ;;  %337 = vset.pattern.permute.xlu0 %v348_v2  ;;  %v207_v3 = vld [vmem:[%s418_s2] sm:$0xff]  ;;  %v180_v5 = vld [vmem:[%s417_s1 + $0x8] sm:$0xff]  ;;  %v210_v7 = vld [vmem:[%s418_s2 + $0x18] sm:$0xff]  ;;  %s317_s30 = sshll.u32 %s421_s13, 4  ;;  %s318_s7 = sshll.u32 %s421_s13, 5 }
   0xd   : > { %195 = vperm.xlu1 %338, %v181_v0   ;;  %185 = vperm.xlu0 %337, %v179_v1   ;;  %v208_v6 = vld [vmem:[%s418_s2 + $0x8] sm:$0xff]  ;;  %v209_v8 = vld [vmem:[%s418_s2 + $0x10] sm:$0xff]  ;;  %s165_s6 = scalar_lea.vmem %s416_s0, %s317_s30  ;;  %s407_s10 = scalar_lea.vmem %s419_s3, %s318_s7 }
   0xe   : > { %339 = vset.pattern.permute.xlu2 %v348_v2  ;;  %v320_v9 = vld [vmem:[%s165_s6] sm:$0xff]   ;;  %v327_v19 = vld [vmem:[%s165_s6 + $0x8] sm:$0xff]  }
   0xf   : > { %213 = vperm.xlu2 %339, %v207_v3   ;;  %v321_v10 = vunpack.c.l.bf16 %v320_v9  ;;  %v322_v17 = vunpack.c.h.bf16 %v320_v9  ;;  %v325_v24 = vunpack.c.l.bf16 %v327_v19  ;;  %v326_v25 = vunpack.c.h.bf16 %v327_v19 }
  0x15   : > { %200 = vperm.xlu1 %338, %v182_v4   ;;  %190 = vperm.xlu0 %337, %v180_v5  }
  0x17   : > { %218 = vperm.xlu2 %339, %v208_v6  }
  0x1d   : > { %228 = vperm.xlu1 %338, %v210_v7   ;;  %223 = vperm.xlu0 %337, %v209_v8  }
  0x69   : > { %v214_v11 = vpop.permute.xlu2 %213 }
  0x71   : > { %v219_v23 = vpop.permute.xlu2 %218 }
  0x7f   : > { %v196_v12 = vpop.permute.xlu1 %195  ;;  %v186_v13 = vpop.permute.xlu0 %185 }
  0x80   : > { %v203_v14 = vmul.f32 %v321_v10, %v186_v13  ;;  %v205_v28 = vmul.f32 %v325_v24, %v196_v12 }
  0x82   : > { %v231_v15 = vadd.f32 %v214_v11, %v203_v14 }
  0x84   : > { %vm235_vm0 = vcmp.ge.f32.partialorder %v231_v15, 0.0  ;;  %v239_v16 = vmul.f32 0.2, %v231_v15 }
  0x86   : > { %v243_v18 = vsel %vm235_vm0, %v231_v15, %v239_v16 }
  0x87   : > { %247 = vst [vmem:[%s407_s10] sm:$0xff] %v243_v18  ;;  %v201_v20 = vpop.permute.xlu1 %200  ;;  %v191_v21 = vpop.permute.xlu0 %190 }
  0x88   : > { %v204_v22 = vmul.f32 %v322_v17, %v191_v21  ;;  %v206_v29 = vmul.f32 %v326_v25, %v201_v20 }
  0x8a   : > { %v232_v26 = vadd.f32 %v219_v23, %v204_v22 }
  0x8c   : > { %vm236_vm1 = vcmp.ge.f32.partialorder %v232_v26, 0.0  ;;  %v240_v27 = vmul.f32 0.2, %v232_v26 }
  0x8e   : > { %v244_v30 = vsel %vm236_vm1, %v232_v26, %v240_v27 }
  0x8f   : > { %248 = vst [vmem:[%s407_s10 + $0x8] sm:$0xff] %v244_v30  ;;  %v229_v31 = vpop.permute.xlu1 %228  ;;  %v224_v32 = vpop.permute.xlu0 %223 }
  0x90   : > { %v234_v33 = vadd.f32 %v229_v31, %v206_v29  ;;  %v233_v34 = vadd.f32 %v224_v32, %v205_v28 }
  0x92   : > { %vm238_vm2 = vcmp.ge.f32.partialorder %v234_v33, 0.0  ;;  %v242_v35 = vmul.f32 0.2, %v234_v33  ;;  %vm237_vm3 = vcmp.ge.f32.partialorder %v233_v34, 0.0  ;;  %v241_v36 = vmul.f32 0.2, %v233_v34 }
  0x94   : > { %v246_v37 = vsel %vm238_vm2, %v234_v33, %v242_v35  ;;  %v245_v38 = vsel %vm237_vm3, %v233_v34, %v241_v36 }
  0x95   : > { %250 = vst [vmem:[%s407_s10 + $0x18] sm:$0xff] %v246_v37 }
  0x96   : > { %249 = vst [vmem:[%s407_s10 + $0x10] sm:$0xff] %v245_v38 }
  0x97 PF: > { %s13_s12 = sadd.s32 1, %s346_s12  }
  0x98   : > { %p10_p4 = scmp.ge.s32.totalorder %s13_s12, 4  }
  0x9a   :  { %12 = sbr.rel (!%p10_p4) target bundleno = 1 (0x1), region = 62 }

// kernel: unet_down_forward.2
= control target key start
LH: loop header
LB: loop body
LE: loop exit
PB: predicated region body
PF: predicated region fallthrough
CT: control target
= control target key end

     0   :  { %s1537_s18 = smov 0   ;;  %s1742_s0 = inlined_call_operand.vmem [shape: bf16[16,32,4], index: 0, kind: input, shape index: {}]   ;;  %s1743_s1 = inlined_call_operand.vmem [shape: bf16[2,16,4,128], index: 1, kind: input, shape index: {}]   ;;  %s1744_s2 = inlined_call_operand.vmem [shape: f32[1,128], index: 2, kind: input, shape index: {}]   ;;  %s1745_s3 = inlined_call_operand.vmem [shape: bf16[2,32,128], index: 3, kind: output, shape index: {0}]   ;;  %s1746_s4 = inlined_call_operand.vmem [shape: f32[2,32,1], index: 4, kind: output, shape index: {1}]   ;;  %s1747_s5 = inlined_call_operand.vmem [shape: f32[2,32,1], index: 5, kind: output, shape index: {2}]  }
   0x1 LB: > { %s1193_s19 = sadd.s32 4294967295, %s1505_s18   ;;  %p1197_p0 = scmp.ge.s32.totalorder %s1505_s18, 1  ;;  %s1505_s18 = sphi %s1537_s18, %s16_s18  }
   0x2   : > { %p192_p1 = scmp.lt.s32.totalorder %s1505_s18, 3 }
   0x4   : > { %p193_p2 = pnand %p1197_p0, %p192_p1 }
   0x5   : > { %p230_p3 = scmp.lt.s32.totalorder (!%p193_p2), %s1193_s19, 1 }
   0x6   : > { %196 = sbr.rel (%p193_p2) target bundleno = 403 (0x193), region = 32 }
   0xb   : > { %s1749_s19 = smov (!%p230_p3, %s1193_s19), 1  ;;  %vm280_vm0 = vcmask 1041408   ;;  %v1449_v0 = vld [vmem:[%s1742_s0 + $0x40] sm:$0xff]  ;;  %vm273_vm1 = vcmask 31744   ;;  %v1450_v28 = vld [vmem:[%s1742_s0 + $0x48] sm:$0xff]  ;;  %v1455_v32 = vld [vmem:[%s1742_s0 + $0x10] sm:$0xff] }
   0xc   : > { %s1548_s20 = sshll.u32 %s1749_s19, 5  ;;  %v1447_v1 = vld [vmem:[%s1742_s0] sm:$0xff]  ;;  %v1448_v29 = vld [vmem:[%s1742_s0 + $0x8] sm:$0xff]  ;;  %v1457_v33 = vld [vmem:[%s1742_s0 + $0x50] sm:$0xff]  ;;  %s1444_s25 = sshll.u32 %s1749_s19, 4  ;;  %vm1043_vm2 = vcmask 7168  }
   0xd   : > { %s1554_s23 = scalar_lea.vmem %s1743_s1, %s1548_s20  ;;  %v1451_v9 = vld [vmem:[%s1742_s0 + $0x80] sm:$0xff]  ;;  %v1452_v30 = vld [vmem:[%s1742_s0 + $0x88] sm:$0xff]  ;;  %v1459_v34 = vld [vmem:[%s1742_s0 + $0x90] sm:$0xff]  ;;  %s239_s28 = scalar_lea.vmem %s1745_s3, %s1444_s25 }
   0xe   : > { %v1206_v2 = vld [vmem:[%s1554_s23 + $0x8] sm:$0x3]  ;;  %v251_v3 = vld [vmem:[%s1554_s23] sm:$0x3]  ;;  %v1231_v4 = vld [vmem:[%s1554_s23 + $0x10] sm:$0x3]  ;;  %s244_s30 = scalar_lea.vmem %s1746_s4, %s1548_s20  ;;  %s249_s8 = scalar_lea.vmem %s1747_s5, %s1548_s20 }
   0xf   : > { %v282_v5 = vsel %vm280_vm0, %v1206_v2, 0  ;;  %v320_v6 = vsel %vm280_vm0, %v251_v3, 0  ;;  %v365_v7 = vsel %vm280_vm0, %v1231_v4, 0  ;;  %v1246_v8 = vld [vmem:[%s1554_s23 + $0x18] sm:$0x3]  ;;  %v1453_v11 = vld [vmem:[%s1742_s0 + $0xc0] sm:$0xff] }
  0x10   : > { %291 = vmatpush.bf16.msra.mxu0 %v282_v5  ;;  %329 = vmatpush.bf16.msra.mxu1 %v320_v6  ;;  %v414_v10 = vsel %vm280_vm0, %v1246_v8, 0  ;;  %v1291_v12 = vld [vmem:[%s1554_s23 + $0x12] sm:$0x3]  ;;  %v1261_v13 = vld [vmem:[%s1554_s23 + $0x2] sm:$0x3]  ;;  %v1454_v31 = vld [vmem:[%s1742_s0 + $0xc8] sm:$0xff] }
  0x11   : > { %374 = vmatpush.bf16.msra.mxu2 %v365_v7  ;;  %423 = vmatpush.bf16.msra.mxu3 %v414_v10  ;;  %v561_v14 = vsel %vm280_vm0, %v1291_v12, 0  ;;  %v463_v15 = vsel %vm280_vm0, %v1261_v13, 0  ;;  %v1306_v16 = vld [vmem:[%s1554_s23 + $0x1a] sm:$0x3]  ;;  %v1276_v17 = vld [vmem:[%s1554_s23 + $0xa] sm:$0x3] }
  0x12   : > { %v610_v18 = vsel %vm280_vm0, %v1306_v16, 0  ;;  %v512_v19 = vsel %vm280_vm0, %v1276_v17, 0  ;;  %v1351_v20 = vld [vmem:[%s1554_s23 + $0x14] sm:$0x3]  ;;  %v1321_v21 = vld [vmem:[%s1554_s23 + $0x4] sm:$0x3] }
  0x13   : > { %1219 = vmatmul.msk.bf16.vlgmr.msra.gmra.mxu0 %vm273_vm1, %v1449_v0  ;;  %1229 = vmatmul.msk.bf16.vlgmr.msra.gmra.mxu1 %vm273_vm1, %v1447_v1  ;;  %v1366_v22 = vld [vmem:[%s1554_s23 + $0x1c] sm:$0x3]  ;;  %v757_v23 = vsel %vm280_vm0, %v1351_v20, 0  ;;  %v659_v24 = vsel %vm280_vm0, %v1321_v21, 0  ;;  %v1336_v26 = vld [vmem:[%s1554_s23 + $0xc] sm:$0x3] }
  0x14   : > { %472 = vmatpush.bf16.msrb.mxu0 %v463_v15  ;;  %1244 = vmatmul.msk.bf16.vlgmr.msra.gmra.mxu2 %vm273_vm1, %v1451_v9  ;;  %v806_v25 = vsel %vm280_vm0, %v1366_v22, 0  ;;  %v708_v27 = vsel %vm280_vm0, %v1336_v26, 0  ;;  %v1461_v35 = vld [vmem:[%s1742_s0 + $0xd0] sm:$0xff]  ;;  %v1381_v37 = vld [vmem:[%s1554_s23 + $0x6] sm:$0x3]  ;;  %v1456_v44 = vld [vmem:[%s1742_s0 + $0x18] sm:$0xff] }
  0x15   : > { %570 = vmatpush.bf16.msrb.mxu2 %v561_v14  ;;  %1259 = vmatmul.msk.bf16.vlgmr.msra.gmra.mxu3 %vm273_vm1, %v1453_v11  ;;  %v1411_v36 = vld [vmem:[%s1554_s23 + $0x16] sm:$0x3]  ;;  %v1426_v38 = vld [vmem:[%s1554_s23 + $0x1e] sm:$0x3]  ;;  %v855_v40 = vsel %vm280_vm0, %v1381_v37, 0  ;;  %v1463_v48 = vld [vmem:[%s1742_s0 + $0x20] sm:$0xff] }
  0x16   : > { %619 = vmatpush.bf16.msrb.mxu3 %v610_v18  ;;  %521 = vmatpush.bf16.msrb.mxu1 %v512_v19  ;;  %v953_v39 = vsel %vm280_vm0, %v1411_v36, 0  ;;  %v1002_v41 = vsel %vm280_vm0, %v1426_v38, 0  ;;  %v1396_v42 = vld [vmem:[%s1554_s23 + $0xe] sm:$0x3]  ;;  %v1458_v45 = vld [vmem:[%s1742_s0 + $0x58] sm:$0xff]  ;;  %v1465_v49 = vld [vmem:[%s1742_s0 + $0x60] sm:$0xff] }
  0x17   : > { %v904_v43 = vsel %vm280_vm0, %v1396_v42, 0  ;;  %v1460_v46 = vld [vmem:[%s1742_s0 + $0x98] sm:$0xff]  ;;  %v1467_v50 = vld [vmem:[%s1742_s0 + $0xa0] sm:$0xff]  ;;  %v1464_v52 = vld [vmem:[%s1742_s0 + $0x28] sm:$0xff] }
  0x18   : > { %668 = vmatpush.bf16.msra.mxu0 %v659_v24  ;;  %v1462_v47 = vld [vmem:[%s1742_s0 + $0xd8] sm:$0xff]  ;;  %v1469_v51 = vld [vmem:[%s1742_s0 + $0xe0] sm:$0xff]  ;;  %v1466_v53 = vld [vmem:[%s1742_s0 + $0x68] sm:$0xff] }
  0x19   : > { %766 = vmatpush.bf16.msra.mxu2 %v757_v23  ;;  %v1468_v54 = vld [vmem:[%s1742_s0 + $0xa8] sm:$0xff]  ;;  %v1471_v56 = vld [vmem:[%s1742_s0 + $0x30] sm:$0xff]  ;;  %v1472_v60 = vld [vmem:[%s1742_s0 + $0x38] sm:$0xff] }
  0x1a   : > { %815 = vmatpush.bf16.msra.mxu3 %v806_v25  ;;  %717 = vmatpush.bf16.msra.mxu1 %v708_v27  ;;  %v1470_v55 = vld [vmem:[%s1742_s0 + $0xe8] sm:$0xff]  ;;  %v1473_v57 = vld [vmem:[%s1742_s0 + $0x70] sm:$0xff]  ;;  %v1474_v61 = vld [vmem:[%s1742_s0 + $0x78] sm:$0xff] }
  0x1b   : > { %v1475_v58 = vld [vmem:[%s1742_s0 + $0xb0] sm:$0xff]  ;;  %v1476_v62 = vld [vmem:[%s1742_s0 + $0xb8] sm:$0xff] }
  0x1c   : > { %v1477_v59 = vld [vmem:[%s1742_s0 + $0xf0] sm:$0xff]  ;;  %v1478_v63 = vld [vmem:[%s1742_s0 + $0xf8] sm:$0xff] }
  0x23   : > { %1220 = vmatmul.msk.bf16.gmra.mxu0 %vm273_vm1, %v1450_v28  ;;  %1230 = vmatmul.msk.bf16.gmra.mxu1 %vm273_vm1, %v1448_v29 }
  0x24   : > { %1245 = vmatmul.msk.bf16.gmra.mxu2 %vm273_vm1, %v1452_v30 }
  0x25   : > { %1260 = vmatmul.msk.bf16.gmra.mxu3 %vm273_vm1, %v1454_v31 }
  0x33   : > { %1274 = vmatmul.msk.bf16.vlgmr.msrb.gmra.mxu0 %vm273_vm1, %v1455_v32  ;;  %1289 = vmatmul.msk.bf16.vlgmr.msrb.gmra.mxu1 %vm273_vm1, %v1457_v33 }
  0x34   : > { %1304 = vmatmul.msk.bf16.vlgmr.msrb.gmra.mxu2 %vm273_vm1, %v1459_v34  ;;  %864 = vmatpush.bf16.msrb.mxu0 %v855_v40 }
  0x35   : > { %1319 = vmatmul.msk.bf16.vlgmr.msrb.gmra.mxu3 %vm273_vm1, %v1461_v35  ;;  %962 = vmatpush.bf16.msrb.mxu2 %v953_v39 }
  0x36   : > { %1011 = vmatpush.bf16.msrb.mxu3 %v1002_v41  ;;  %913 = vmatpush.bf16.msrb.mxu1 %v904_v43 }
  0x43   : > { %1275 = vmatmul.msk.bf16.gmra.mxu0 %vm273_vm1, %v1456_v44  ;;  %1290 = vmatmul.msk.bf16.gmra.mxu1 %vm273_vm1, %v1458_v45 }
  0x44   : > { %1305 = vmatmul.msk.bf16.gmra.mxu2 %vm273_vm1, %v1460_v46 }
  0x45   : > { %1320 = vmatmul.msk.bf16.gmra.mxu3 %vm273_vm1, %v1462_v47 }
  0x53   : > { %1334 = vmatmul.msk.bf16.vlgmr.msra.gmra.mxu0 %vm273_vm1, %v1463_v48  ;;  %1349 = vmatmul.msk.bf16.vlgmr.msra.gmra.mxu1 %vm273_vm1, %v1465_v49 }
  0x54   : > { %1364 = vmatmul.msk.bf16.vlgmr.msra.gmra.mxu2 %vm273_vm1, %v1467_v50 }
  0x55   : > { %1379 = vmatmul.msk.bf16.vlgmr.msra.gmra.mxu3 %vm273_vm1, %v1469_v51 }
  0x63   : > { %1335 = vmatmul.msk.bf16.gmra.mxu0 %vm273_vm1, %v1464_v52  ;;  %1350 = vmatmul.msk.bf16.gmra.mxu1 %vm273_vm1, %v1466_v53 }
  0x64   : > { %1365 = vmatmul.msk.bf16.gmra.mxu2 %vm273_vm1, %v1468_v54 }
  0x65   : > { %1380 = vmatmul.msk.bf16.gmra.mxu3 %vm273_vm1, %v1470_v55 }
  0x73   : > { %1394 = vmatmul.msk.bf16.vlgmr.msrb.gmra.mxu0 %vm273_vm1, %v1471_v56  ;;  %1409 = vmatmul.msk.bf16.vlgmr.msrb.gmra.mxu1 %vm273_vm1, %v1473_v57 }
  0x74   : > { %1424 = vmatmul.msk.bf16.vlgmr.msrb.gmra.mxu2 %vm273_vm1, %v1475_v58 }
  0x75   : > { %1439 = vmatmul.msk.bf16.vlgmr.msrb.gmra.mxu3 %vm273_vm1, %v1477_v59 }
  0x83   : > { %1395 = vmatmul.msk.bf16.gmra.mxu0 %vm273_vm1, %v1472_v60  ;;  %1410 = vmatmul.msk.bf16.gmra.mxu1 %vm273_vm1, %v1474_v61 }
  0x84   : > { %1425 = vmatmul.msk.bf16.gmra.mxu2 %vm273_vm1, %v1476_v62 }
  0x85   : > { %1440 = vmatmul.msk.bf16.gmra.mxu3 %vm273_vm1, %v1478_v63 }
  0x90   : > { %v293_v0 = vpop.f32.mrf.mxu0  ;;  %v331_v1 = vpop.f32.mrf.mxu1 }
  0x91   : > { %v332_v2 = vadd.f32 %v331_v1, %v293_v0 }
  0x97   : > { %v376_v3 = vpop.f32.mrf.mxu2 }
  0x98   : > { %v425_v4 = vpop.f32.mrf.mxu3  ;;  %v386_v5 = vadd.f32 %v376_v3, %v332_v2  ;;  %v295_v6 = vpop.f32.mrf.mxu0 }
  0x99   : > { %v333_v7 = vpop.f32.mrf.mxu1 }
  0x9a   : > { %v334_v8 = vadd.f32 %v333_v7, %v295_v6  ;;  %v435_v9 = vadd.f32 %v425_v4, %v386_v5 }
  0x9f   : > { %v378_v10 = vpop.f32.mrf.mxu2 }
  0xa0   : > { %v427_v11 = vpop.f32.mrf.mxu3  ;;  %v387_v12 = vadd.f32 %v378_v10, %v334_v8  ;;  %v298_v13 = vpop.f32.mrf.mxu0 }
  0xa1   : > { %v336_v14 = vpop.f32.mrf.mxu1 }
  0xa2   : > { %v337_v15 = vadd.f32 %v336_v14, %v298_v13  ;;  %v436_v16 = vadd.f32 %v427_v11, %v387_v12 }
  0xa7   : > { %v381_v17 = vpop.f32.mrf.mxu2 }
  0xa8   : > { %v430_v18 = vpop.f32.mrf.mxu3  ;;  %v388_v19 = vadd.f32 %v381_v17, %v337_v15  ;;  %v300_v20 = vpop.f32.mrf.mxu0 }
  0xa9   : > { %v338_v21 = vpop.f32.mrf.mxu1 }
  0xaa   : > { %v339_v22 = vadd.f32 %v338_v21, %v300_v20  ;;  %v437_v23 = vadd.f32 %v430_v18, %v388_v19 }
  0xaf   : > { %v383_v24 = vpop.f32.mrf.mxu2 }
  0xb0   : > { %v432_v25 = vpop.f32.mrf.mxu3  ;;  %v389_v26 = vadd.f32 %v383_v24, %v339_v22  ;;  %v474_v27 = vpop.f32.mrf.mxu0 }
  0xb1   : > { %v523_v28 = vpop.f32.mrf.mxu1  ;;  %v484_v50 = vadd.f32 %v474_v27, %v435_v9 }
  0xb2   : > { %v438_v29 = vadd.f32 %v432_v25, %v389_v26 }
  0xb3   : > { %v533_v51 = vadd.f32 %v523_v28, %v484_v50  ;;  %v1498_v28 = vld [vmem:[%s1744_s2] ss:$0 sm:$0xff] }
  0xb7   : > { %v572_v30 = vpop.f32.mrf.mxu2 }
  0xb8   : > { %v621_v31 = vpop.f32.mrf.mxu3  ;;  %v476_v32 = vpop.f32.mrf.mxu0  ;;  %v582_v54 = vadd.f32 %v572_v30, %v533_v51 }
  0xb9   : > { %v525_v33 = vpop.f32.mrf.mxu1  ;;  %v485_v57 = vadd.f32 %v476_v32, %v436_v16 }
  0xba   : > { %v631_v58 = vadd.f32 %v621_v31, %v582_v54 }
  0xbb   : > { %v534_v59 = vadd.f32 %v525_v33, %v485_v57 }
  0xbf   : > { %v574_v34 = vpop.f32.mrf.mxu2 }
  0xc0   : > { %v623_v35 = vpop.f32.mrf.mxu3  ;;  %v479_v36 = vpop.f32.mrf.mxu0  ;;  %v583_v63 = vadd.f32 %v574_v34, %v534_v59 }
  0xc1   : > { %v528_v37 = vpop.f32.mrf.mxu1  ;;  %v486_v2 = vadd.f32 %v479_v36, %v437_v23 }
  0xc2   : > { %v632_v4 = vadd.f32 %v623_v35, %v583_v63 }
  0xc3   : > { %v535_v6 = vadd.f32 %v528_v37, %v486_v2 }
  0xc7   : > { %v577_v38 = vpop.f32.mrf.mxu2 }
  0xc8   : > { %v626_v39 = vpop.f32.mrf.mxu3  ;;  %v481_v40 = vpop.f32.mrf.mxu0  ;;  %v584_v10 = vadd.f32 %v577_v38, %v535_v6 }
  0xc9   : > { %v530_v41 = vpop.f32.mrf.mxu1  ;;  %v487_v14 = vadd.f32 %v481_v40, %v438_v29 }
  0xca   : > { %v633_v17 = vadd.f32 %v626_v39, %v584_v10 }
  0xcb   : > { %v536_v19 = vadd.f32 %v530_v41, %v487_v14 }
  0xcf   : > { %v579_v42 = vpop.f32.mrf.mxu2 }
  0xd0   : > { %v628_v43 = vpop.f32.mrf.mxu3  ;;  %v670_v44 = vpop.f32.mrf.mxu0  ;;  %v585_v24 = vadd.f32 %v579_v42, %v536_v19 }
  0xd1   : > { %v719_v45 = vpop.f32.mrf.mxu1  ;;  %v680_v60 = vadd.f32 %v670_v44, %v631_v58 }
  0xd2   : > { %v634_v33 = vadd.f32 %v628_v43, %v585_v24 }
  0xd3   : > { %v729_v3 = vadd.f32 %v719_v45, %v680_v60 }
  0xd7   : > { %v768_v46 = vpop.f32.mrf.mxu2 }
  0xd8   : > { %v817_v47 = vpop.f32.mrf.mxu3  ;;  %v672_v48 = vpop.f32.mrf.mxu0  ;;  %v778_v5 = vadd.f32 %v768_v46, %v729_v3 }
  0xd9   : > { %v721_v49 = vpop.f32.mrf.mxu1  ;;  %v681_v7 = vadd.f32 %v672_v48, %v632_v4 }
  0xda   : > { %v827_v11 = vadd.f32 %v817_v47, %v778_v5 }
  0xdb   : > { %v730_v15 = vadd.f32 %v721_v49, %v681_v7 }
  0xdf   : > { %v770_v52 = vpop.f32.mrf.mxu2 }
  0xe0   : > { %v819_v53 = vpop.f32.mrf.mxu3  ;;  %v675_v55 = vpop.f32.mrf.mxu0  ;;  %v779_v18 = vadd.f32 %v770_v52, %v730_v15 }
  0xe1   : > { %v724_v56 = vpop.f32.mrf.mxu1  ;;  %v682_v20 = vadd.f32 %v675_v55, %v633_v17 }
  0xe2   : > { %v828_v25 = vadd.f32 %v819_v53, %v779_v18 }
  0xe3   : > { %v731_v29 = vadd.f32 %v724_v56, %v682_v20 }
  0xe7   : > { %v773_v61 = vpop.f32.mrf.mxu2 }
  0xe8   : > { %v822_v62 = vpop.f32.mrf.mxu3  ;;  %v677_v0 = vpop.f32.mrf.mxu0  ;;  %v780_v34 = vadd.f32 %v773_v61, %v731_v29 }
  0xe9   : > { %v726_v1 = vpop.f32.mrf.mxu1  ;;  %v683_v36 = vadd.f32 %v677_v0, %v634_v33 }
  0xea   : > { %v829_v41 = vadd.f32 %v822_v62, %v780_v34 }
  0xeb   : > { %v732_v45 = vadd.f32 %v726_v1, %v683_v36 }
  0xef   : > { %v775_v8 = vpop.f32.mrf.mxu2 }
  0xf0   : > { %v824_v9 = vpop.f32.mrf.mxu3  ;;  %v866_v12 = vpop.f32.mrf.mxu0  ;;  %v781_v48 = vadd.f32 %v775_v8, %v732_v45 }
  0xf1   : > { %v915_v13 = vpop.f32.mrf.mxu1  ;;  %v876_v16 = vadd.f32 %v866_v12, %v827_v11 }
  0xf2   : > { %v830_v55 = vadd.f32 %v824_v9, %v781_v48 }
  0xf3   : > { %v925_v21 = vadd.f32 %v915_v13, %v876_v16 }
  0xf7   : > { %v964_v22 = vpop.f32.mrf.mxu2 }
  0xf8   : > { %v1013_v23 = vpop.f32.mrf.mxu3  ;;  %v974_v26 = vadd.f32 %v964_v22, %v925_v21  ;;  %v868_v27 = vpop.f32.mrf.mxu0 }
  0xf9   : > { %v917_v30 = vpop.f32.mrf.mxu1  ;;  %v877_v32 = vadd.f32 %v868_v27, %v828_v25 }
  0xfa   : > { %v1023_v31 = vadd.f32 %v1013_v23, %v974_v26 }
  0xfb   : > { %v926_v37 = vadd.f32 %v917_v30, %v877_v32 }
  0xfc   : > { %v1031_v35 = vmul.f32 %v1498_v28, %v1023_v31 }
  0xfe   : > { %1035 = vadd.xlane.f32.xlu0 %v1031_v35  ;;  %v1048_v38 = vmul.f32 %v1031_v35, %v1031_v35 }
  0xff   : > { %v966_v39 = vpop.f32.mrf.mxu2 }
 0x100   : > { %v1015_v40 = vpop.f32.mrf.mxu3  ;;  %v975_v42 = vadd.f32 %v966_v39, %v926_v37  ;;  %1052 = vadd.xlane.f32.xlu2 %v1048_v38  ;;  %v871_v44 = vpop.f32.mrf.mxu0 }
 0x101   : > { %v878_v47 = vadd.f32 %v871_v44, %v829_v41  ;;  %v920_v43 = vpop.f32.mrf.mxu1 }
 0x102   : > { %v1024_v46 = vadd.f32 %v1015_v40, %v975_v42 }
 0x103   : > { %v927_v51 = vadd.f32 %v920_v43, %v878_v47 }
 0x104   : > { %v1482_v49 = vpack.c.bf16 %v1024_v46, %v1023_v31  ;;  %v1032_v50 = vmul.f32 %v1498_v28, %v1024_v46 }
 0x106   : > { %1483 = vst [vmem:[%s239_s28] sm:$0xff] %v1482_v49   ;;  %1037 = vadd.xlane.f32.xlu0 %v1032_v50  ;;  %v1049_v52 = vmul.f32 %v1032_v50, %v1032_v50 }
 0x107   : > { %v969_v53 = vpop.f32.mrf.mxu2 }
 0x108   : > { %v1018_v54 = vpop.f32.mrf.mxu3  ;;  %v976_v56 = vadd.f32 %v969_v53, %v927_v51  ;;  %1054 = vadd.xlane.f32.xlu2 %v1049_v52  ;;  %v873_v57 = vpop.f32.mrf.mxu0 }
 0x109   : > { %v879_v59 = vadd.f32 %v873_v57, %v830_v55  ;;  %v922_v61 = vpop.f32.mrf.mxu1 }
 0x10a   : > { %v1025_v58 = vadd.f32 %v1018_v54, %v976_v56 }
 0x10b   : > { %v928_v62 = vadd.f32 %v922_v61, %v879_v59 }
 0x10c   : > { %v1033_v60 = vmul.f32 %v1498_v28, %v1025_v58 }
 0x10e   : > { %1039 = vadd.xlane.f32.xlu1 %v1033_v60  ;;  %v1050_v63 = vmul.f32 %v1033_v60, %v1033_v60 }
 0x10f   : > { %v971_v0 = vpop.f32.mrf.mxu2 }
 0x110   : > { %v977_v1 = vadd.f32 %v971_v0, %v928_v62  ;;  %1056 = vadd.xlane.f32.xlu0 %v1050_v63  ;;  %v1020_v2 = vpop.f32.mrf.mxu3 }
 0x112   : > { %v1026_v3 = vadd.f32 %v1020_v2, %v977_v1 }
 0x114   : > { %v1487_v4 = vpack.c.bf16 %v1026_v3, %v1025_v58  ;;  %v1034_v5 = vmul.f32 %v1498_v28, %v1026_v3 }
 0x116   : > { %1489 = vst [vmem:[%s239_s28 + $0x8] sm:$0xff] %v1487_v4   ;;  %1041 = vadd.xlane.f32.xlu1 %v1034_v5  ;;  %v1051_v6 = vmul.f32 %v1034_v5, %v1034_v5 }
 0x11e   : > { %1058 = vadd.xlane.f32.xlu1 %v1051_v6 }
 0x171   : > { %v1036_v7 = vpop.xlane.xlu0 %1035 }
 0x172   : > { %1044 = vst.msk [vmem:[%s244_s30] sm:$0xff] %vm1043_vm2, %v1036_v7 }
 0x173   : > { %v1053_v8 = vpop.xlane.xlu2 %1052 }
 0x174   : > { %1060 = vst.msk [vmem:[%s249_s8] sm:$0xff] %vm1043_vm2, %v1053_v8 }
 0x179   : > { %v1038_v9 = vpop.xlane.xlu0 %1037 }
 0x17a   : > { %1045 = vst.msk [vmem:[%s244_s30 + $0x8] sm:$0xff] %vm1043_vm2, %v1038_v9 }
 0x17b   : > { %v1055_v10 = vpop.xlane.xlu2 %1054 }
 0x17c   : > { %1061 = vst.msk [vmem:[%s249_s8 + $0x8] sm:$0xff] %vm1043_vm2, %v1055_v10 }
 0x181   : > { %v1040_v11 = vpop.xlane.xlu1 %1039 }
 0x182   : > { %1046 = vst.msk [vmem:[%s244_s30 + $0x10] sm:$0xff] %vm1043_vm2, %v1040_v11 }
 0x183   : > { %v1057_v12 = vpop.xlane.xlu0 %1056 }
 0x184   : > { %1062 = vst.msk [vmem:[%s249_s8 + $0x10] sm:$0xff] %vm1043_vm2, %v1057_v12 }
 0x189   : > { %v1042_v13 = vpop.xlane.xlu1 %1041 }
 0x18a   : > { %1047 = vst.msk [vmem:[%s244_s30 + $0x18] sm:$0xff] %vm1043_vm2, %v1042_v13 }
 0x191   : > { %v1059_v14 = vpop.xlane.xlu1 %1058 }
 0x192   : > { %1063 = vst.msk [vmem:[%s249_s8 + $0x18] sm:$0xff] %vm1043_vm2, %v1059_v14 }
 0x193 PF: > { %s16_s18 = sadd.s32 1, %s1505_s18  }
 0x194   : > { %p13_p4 = scmp.ge.s32.totalorder %s16_s18, 4  }
 0x196   :  { %15 = sbr.rel (!%p13_p4) target bundleno = 1 (0x1), region = 116 }

</bundles_post_ra>
